<compile_context>
chip_gen: v5e
topology: v5e:2x2
jax: 0.10.0
libtpu: 0.0.40
codegen_flags: <defaults>
</compile_context>

<pallas_src>
import math
from functools import partial

import jax
import jax.numpy as jnp
from jax.experimental import pallas as pl
from jax.experimental.pallas import tpu as pltpu


# ----------------------------- config (small, consistent with the module) ----
HIDDEN = 64
NUM_HEADS = 4
HEAD_DIM = HIDDEN // NUM_HEADS          # 16
NUM_KV_HEADS = 2                        # GQA: num_key_value_groups = 2
N_REP = NUM_HEADS // NUM_KV_HEADS
ROPE_THETA = 10000.0
RATIOS = (0.5, 0.5)                     # exercise the low-rank (Sequential) path


def determine_target_rank(dim1, dim2, ratio):
    rank = math.ceil(ratio * (dim1 * dim2) / (dim1 + dim2))
    return rank // 8 * 8


QK_RANK = determine_target_rank(HIDDEN, NUM_HEADS * HEAD_DIM, RATIOS[0])   # 16
O_RANK = determine_target_rank(HIDDEN, NUM_HEADS * HEAD_DIM, RATIOS[1])    # 16


# ----------------------------- fused Pallas kernel ---------------------------
def _fused_attention_kernel(
    x_ref, mask_ref,
    cos_q_ref, sin_q_ref, cos_k_ref, sin_k_ref,
    rq_ref, rk_ref,
    wq1_ref, wq2_ref, bq2_ref,
    wk1_ref, wk2_ref, bk2_ref,
    wv_ref,
    wo1_ref, wo2_ref, bo2_ref,
    o_ref,
    *, batch, seq, n_heads, n_kv_heads, head_dim,
):
    n_rep = n_heads // n_kv_heads
    f32 = jnp.float32

    x = x_ref[...]                                   # (B*S, H)
    wo1 = wo1_ref[...]                               # (NH*D, O_RANK)
    wo2 = wo2_ref[...]                               # (O_RANK, H)
    bo2 = bo2_ref[...]                               # (1, H)

    # ---- projections: low-rank two-stage q/k, full-rank (bias-free) v -------
    q2d = jnp.dot(jnp.dot(x, wq1_ref[...], preferred_element_type=f32),
                  wq2_ref[...], preferred_element_type=f32) + bq2_ref[...]
    k2d = jnp.dot(jnp.dot(x, wk1_ref[...], preferred_element_type=f32),
                  wk2_ref[...], preferred_element_type=f32) + bk2_ref[...]
    v2d = jnp.dot(x, wv_ref[...], preferred_element_type=f32)

    # ---- RoPE in lane-dense (B*S, heads*D) layout ----------------------------
    # rotate_half per head = block-diagonal +/-1 permutation matmul (MXU),
    # 1/sqrt(head_dim) is already folded into cos_q/sin_q (wrapper).
    q_rot = (q2d * cos_q_ref[...] +
             jnp.dot(q2d, rq_ref[...], preferred_element_type=f32) * sin_q_ref[...])
    k_rot = (k2d * cos_k_ref[...] +
             jnp.dot(k2d, rk_ref[...], preferred_element_type=f32) * sin_k_ref[...])

    # ---- attention per (batch, head): statically unrolled (B*NH tiny steps) --
    for b in range(batch):
        row0 = b * seq
        mask_b = mask_ref[b]                         # (S, S), additive mask
        mid = jnp.zeros((seq, wo1.shape[1]), f32)    # o_proj stage-1 accumulator
        for h in range(n_heads):
            kv = h // n_rep                          # repeat_kv via index arithmetic
            qh = q_rot[row0:row0 + seq, h * head_dim:(h + 1) * head_dim]   # (S, D)
            kh = k_rot[row0:row0 + seq, kv * head_dim:(kv + 1) * head_dim]
            vh = v2d[row0:row0 + seq, kv * head_dim:(kv + 1) * head_dim]

            s = jnp.dot(qh, kh.T, preferred_element_type=f32) + mask_b     # (S, S)
            s = s - jnp.max(s, axis=-1, keepdims=True)                     # stable
            p = jnp.exp(s)
            p = p * pl.reciprocal(jnp.sum(p, axis=-1, keepdims=True), approx=True)

            ctx = jnp.dot(p, vh, preferred_element_type=f32)               # (S, D)
            # o_proj stage 1 folded into the head loop:
            mid = mid + jnp.dot(ctx, wo1[h * head_dim:(h + 1) * head_dim, :],
                                preferred_element_type=f32)

        out_b = jnp.dot(mid, wo2, preferred_element_type=f32) + bo2        # (S, H)
        o_ref[row0:row0 + seq, :] = out_b.astype(o_ref.dtype)


def _full_spec(shape):
    nd = len(shape)
    return pl.BlockSpec(shape, lambda i, _nd=nd: (0,) * _nd)


def _rotate_half_blockdiag(n_heads, head_dim):
    """Per-head rotate_half as a block-diagonal +/-1 matrix: x @ R == rotate_half(x)."""
    half = head_dim // 2
    idx = jnp.arange(half)
    r = jnp.zeros((head_dim, head_dim), jnp.float32)
    r = r.at[idx + half, idx].set(-1.0)
    r = r.at[idx, idx + half].set(1.0)
    return jnp.kron(jnp.eye(n_heads, dtype=jnp.float32), r)


def rope_cos_sin(seq_len, position_ids):
    inv_freq = 1.0 / (ROPE_THETA ** (jnp.arange(0, HEAD_DIM, 2, dtype=jnp.float32) / HEAD_DIM))
    t = jnp.arange(seq_len, dtype=jnp.float32)
    freqs = jnp.einsum("i,j->ij", t, inv_freq)
    emb = jnp.concatenate([freqs, freqs], axis=-1)       # (S, D)
    return jnp.cos(emb)[position_ids], jnp.sin(emb)[position_ids]   # (B, S, D)


# ----------------------------- forward (kernel path) -------------------------
@jax.jit
def llama_attention_forward(params, hidden_states, attention_mask, position_ids):
    B, S, H = hidden_states.shape
    BS = B * S
    x2d = hidden_states.reshape(BS, H)

    # rotary tables, broadcast to the lane-dense per-head layout; 1/sqrt(d)
    # folded into the q tables so the score scaling is free.
    cos_b, sin_b = rope_cos_sin(S, position_ids)          # (B, S, D)
    cos_flat = cos_b.reshape(BS, HEAD_DIM)
    sin_flat = sin_b.reshape(BS, HEAD_DIM)
    scale = 1.0 / math.sqrt(HEAD_DIM)
    cos_q = jnp.tile(cos_flat, (1, NUM_HEADS)) * scale    # (BS, NH*D)
    sin_q = jnp.tile(sin_flat, (1, NUM_HEADS)) * scale
    cos_k = jnp.tile(cos_flat, (1, NUM_KV_HEADS))         # (BS, NKV*D)
    sin_k = jnp.tile(sin_flat, (1, NUM_KV_HEADS))

    rq = _rotate_half_blockdiag(NUM_HEADS, HEAD_DIM)      # (NH*D, NH*D)
    rk = _rotate_half_blockdiag(NUM_KV_HEADS, HEAD_DIM)   # (NKV*D, NKV*D)

    mask = attention_mask.reshape(B, S, S)                # additive mask per batch

    inputs = (
        x2d, mask, cos_q, sin_q, cos_k, sin_k, rq, rk,
        params["wq1_t"], params["wq2_t"], params["bq2"].reshape(1, -1),
        params["wk1_t"], params["wk2_t"], params["bk2"].reshape(1, -1),
        params["wv_t"],
        params["wo1_t"], params["wo2_t"], params["bo2"].reshape(1, -1),
    )

    kernel = partial(_fused_attention_kernel, batch=B, seq=S,
                     n_heads=NUM_HEADS, n_kv_heads=NUM_KV_HEADS, head_dim=HEAD_DIM)

    out2d = pl.pallas_call(
        kernel,
        out_shape=jax.ShapeDtypeStruct((BS, H), jnp.float32),
        grid=(1,),
        in_specs=[_full_spec(a.shape) for a in inputs],
        out_specs=_full_spec((BS, H)),
        compiler_params=pltpu.CompilerParams(dimension_semantics=("arbitrary",)),
    )(*inputs)
    return out2d.reshape(B, S, H)


# ----------------------------- parameter init --------------------------------
def init_params(key):
    ks = jax.random.split(key, 9)
    scale = 0.02

    def w(k, shape):
        return jax.random.normal(k, shape, jnp.float32) * scale

    return {
        # q_proj = Sequential(Linear(H, qk_rank, bias=False), Linear(qk_rank, NH*D, bias=True))
        "wq1_t": w(ks[0], (HIDDEN, QK_RANK)),
        "wq2_t": w(ks[1], (QK_RANK, NUM_HEADS * HEAD_DIM)),
        "bq2": w(ks[2], (NUM_HEADS * HEAD_DIM,)),
        # k_proj = Sequential(Linear(H, qk_rank, bias=False), Linear(qk_rank, NKV*D, bias=True))
        "wk1_t": w(ks[3], (HIDDEN, QK_RANK)),
        "wk2_t": w(ks[4], (QK_RANK, NUM_KV_HEADS * HEAD_DIM)),
        "bk2": w(ks[5], (NUM_KV_HEADS * HEAD_DIM,)),
        # v_proj = Linear(H, NKV*D, bias=False)
        "wv_t": w(ks[6], (HIDDEN, NUM_KV_HEADS * HEAD_DIM)),
        # o_proj = Sequential(Linear(NH*D, o_rank, bias=False), Linear(o_rank, H, bias=True))
        "wo1_t": w(ks[7], (NUM_HEADS * HEAD_DIM, O_RANK)),
        "wo2_t": w(ks[8], (O_RANK, HIDDEN)),
        "bo2": jnp.zeros((HIDDEN,), jnp.float32),
    }


# ----------------------------- pure-JAX reference ----------------------------
def llama_attention_reference(params, hidden_states, attention_mask, position_ids):
    B, S, H = hidden_states.shape
    x2d = hidden_states.reshape(B * S, H)

    q2d = (x2d @ params["wq1_t"]) @ params["wq2_t"] + params["bq2"]
    k2d = (x2d @ params["wk1_t"]) @ params["wk2_t"] + params["bk2"]
    v2d = x2d @ params["wv_t"]

    q = q2d.reshape(B, S, NUM_HEADS, HEAD_DIM).transpose(0, 2, 1, 3)
    k = k2d.reshape(B, S, NUM_KV_HEADS, HEAD_DIM).transpose(0, 2, 1, 3)
    v = v2d.reshape(B, S, NUM_KV_HEADS, HEAD_DIM).transpose(0, 2, 1, 3)

    cos_b, sin_b = rope_cos_sin(S, position_ids)
    cos = cos_b[:, None, :, :]
    sin = sin_b[:, None, :, :]

    def rot_half(x):
        half = x.shape[-1] // 2
        return jnp.concatenate([-x[..., half:], x[..., :half]], axis=-1)

    q = q * cos + rot_half(q) * sin
    k = k * cos + rot_half(k) * sin

    k = jnp.repeat(k, N_REP, axis=1)
    v = jnp.repeat(v, N_REP, axis=1)

    s = jnp.einsum("bhqd,bhkd->bhqk", q, k) / math.sqrt(HEAD_DIM) + attention_mask
    p = jax.nn.softmax(s.astype(jnp.float32), axis=-1)
    attn = jnp.einsum("bhqk,bhkd->bhqd", p, v)

    attn = attn.transpose(0, 2, 1, 3).reshape(B * S, NUM_HEADS * HEAD_DIM)
    out = (attn @ params["wo1_t"]) @ params["wo2_t"] + params["bo2"]
    return out.reshape(B, S, HIDDEN)


# ----------------------------- main -------------------------------------------
if __name__ == "__main__":
    B, S = 2, 8

    key = jax.random.PRNGKey(0)
    k_param, k_x = jax.random.split(key)
    params = init_params(k_param)

    hidden_states = jax.random.normal(k_x, (B, S, HIDDEN), jnp.float32)
    position_ids = jnp.broadcast_to(jnp.arange(S, dtype=jnp.int32), (B, S))

    # causal attention mask (B, 1, S, S): 0 on/below diagonal, large negative above
    causal = jnp.tril(jnp.ones((S, S), jnp.float32))
    attention_mask = jnp.where(causal == 1.0, 0.0, -1e30)[None, None, :, :]
    attention_mask = jnp.broadcast_to(attention_mask, (B, 1, S, S))

    out = llama_attention_forward(params, hidden_states, attention_mask, position_ids)
    out = jax.block_until_ready(out)

    ref = llama_attention_reference(params, hidden_states, attention_mask, position_ids)
    assert out.shape == (B, S, HIDDEN)
    # slightly relaxed rtol: kernel uses the EUP approximate reciprocal for the
    # softmax normalization (reference uses an exact divide).
    assert jnp.allclose(out, ref, rtol=5e-3, atol=1e-6), \
        f"max diff {jnp.max(jnp.abs(out - ref))}"

    print("KERNEL_OK")
</pallas_src>

<mosaic_0001>
module attributes {stable_mosaic.version = 11 : i64} {
  func.func @_fused_attention_kernel(%arg0: i32, %arg1: memref<16x64xf32, #tpu.memory_space<vmem>>, %arg2: memref<2x8x8xf32, #tpu.memory_space<vmem>>, %arg3: memref<16x64xf32, #tpu.memory_space<vmem>>, %arg4: memref<16x64xf32, #tpu.memory_space<vmem>>, %arg5: memref<16x32xf32, #tpu.memory_space<vmem>>, %arg6: memref<16x32xf32, #tpu.memory_space<vmem>>, %arg7: memref<64x64xf32, #tpu.memory_space<vmem>>, %arg8: memref<32x32xf32, #tpu.memory_space<vmem>>, %arg9: memref<64x16xf32, #tpu.memory_space<vmem>>, %arg10: memref<16x64xf32, #tpu.memory_space<vmem>>, %arg11: memref<1x64xf32, #tpu.memory_space<vmem>>, %arg12: memref<64x16xf32, #tpu.memory_space<vmem>>, %arg13: memref<16x32xf32, #tpu.memory_space<vmem>>, %arg14: memref<1x32xf32, #tpu.memory_space<vmem>>, %arg15: memref<64x32xf32, #tpu.memory_space<vmem>>, %arg16: memref<64x16xf32, #tpu.memory_space<vmem>>, %arg17: memref<16x64xf32, #tpu.memory_space<vmem>>, %arg18: memref<1x64xf32, #tpu.memory_space<vmem>>, %arg19: memref<16x64xf32, #tpu.memory_space<vmem>>) attributes {dimension_semantics = [#tpu.dimension_semantics<arbitrary>], iteration_bounds = array<i64: 1>, scalar_prefetch = 0 : i64, scratch_operands = 0 : i64, tpu.core_type = #tpu.core_type<tc>, window_params = [{pipeline_mode = #tpu.pipeline_mode<synchronous>, transform_indices = @transform_0, window_bounds = array<i64: 16, 64>}, {pipeline_mode = #tpu.pipeline_mode<synchronous>, transform_indices = @transform_1, window_bounds = array<i64: 2, 8, 8>}, {pipeline_mode = #tpu.pipeline_mode<synchronous>, transform_indices = @transform_2, window_bounds = array<i64: 16, 64>}, {pipeline_mode = #tpu.pipeline_mode<synchronous>, transform_indices = @transform_3, window_bounds = array<i64: 16, 64>}, {pipeline_mode = #tpu.pipeline_mode<synchronous>, transform_indices = @transform_4, window_bounds = array<i64: 16, 32>}, {pipeline_mode = #tpu.pipeline_mode<synchronous>, transform_indices = @transform_5, window_bounds = array<i64: 16, 32>}, {pipeline_mode = #tpu.pipeline_mode<synchronous>, transform_indices = @transform_6, window_bounds = array<i64: 64, 64>}, {pipeline_mode = #tpu.pipeline_mode<synchronous>, transform_indices = @transform_7, window_bounds = array<i64: 32, 32>}, {pipeline_mode = #tpu.pipeline_mode<synchronous>, transform_indices = @transform_8, window_bounds = array<i64: 64, 16>}, {pipeline_mode = #tpu.pipeline_mode<synchronous>, transform_indices = @transform_9, window_bounds = array<i64: 16, 64>}, {pipeline_mode = #tpu.pipeline_mode<synchronous>, transform_indices = @transform_10, window_bounds = array<i64: 1, 64>}, {pipeline_mode = #tpu.pipeline_mode<synchronous>, transform_indices = @transform_11, window_bounds = array<i64: 64, 16>}, {pipeline_mode = #tpu.pipeline_mode<synchronous>, transform_indices = @transform_12, window_bounds = array<i64: 16, 32>}, {pipeline_mode = #tpu.pipeline_mode<synchronous>, transform_indices = @transform_13, window_bounds = array<i64: 1, 32>}, {pipeline_mode = #tpu.pipeline_mode<synchronous>, transform_indices = @transform_14, window_bounds = array<i64: 64, 32>}, {pipeline_mode = #tpu.pipeline_mode<synchronous>, transform_indices = @transform_15, window_bounds = array<i64: 64, 16>}, {pipeline_mode = #tpu.pipeline_mode<synchronous>, transform_indices = @transform_16, window_bounds = array<i64: 16, 64>}, {pipeline_mode = #tpu.pipeline_mode<synchronous>, transform_indices = @transform_17, window_bounds = array<i64: 1, 64>}, {pipeline_mode = #tpu.pipeline_mode<synchronous>, transform_indices = @transform_18, window_bounds = array<i64: 16, 64>}]} {
    %c0 = arith.constant 0 : index
    %c0_0 = arith.constant 0 : index
    %0 = vector.load %arg1[%c0, %c0_0] : memref<16x64xf32, #tpu.memory_space<vmem>>, vector<16x64xf32>
    %c0_1 = arith.constant 0 : index
    %c0_2 = arith.constant 0 : index
    %1 = vector.load %arg16[%c0_1, %c0_2] : memref<64x16xf32, #tpu.memory_space<vmem>>, vector<64x16xf32>
    %c0_3 = arith.constant 0 : index
    %c0_4 = arith.constant 0 : index
    %2 = vector.load %arg17[%c0_3, %c0_4] : memref<16x64xf32, #tpu.memory_space<vmem>>, vector<16x64xf32>
    %c0_5 = arith.constant 0 : index
    %c0_6 = arith.constant 0 : index
    %3 = vector.load %arg18[%c0_5, %c0_6] : memref<1x64xf32, #tpu.memory_space<vmem>>, vector<1x64xf32>
    %c0_7 = arith.constant 0 : index
    %c0_8 = arith.constant 0 : index
    %4 = vector.load %arg9[%c0_7, %c0_8] : memref<64x16xf32, #tpu.memory_space<vmem>>, vector<64x16xf32>
    %cst = arith.constant dense<0.000000e+00> : vector<16x16xf32>
    %5 = tpu.matmul %0, %4, %cst {dimension_numbers = #tpu.dot_dimension_numbers<[1], [0], [0], [1], [0, 0, 1, 1], [], []>} : vector<16x64xf32>, vector<64x16xf32>, vector<16x16xf32> -> vector<16x16xf32>
    %c0_9 = arith.constant 0 : index
    %c0_10 = arith.constant 0 : index
    %6 = vector.load %arg10[%c0_9, %c0_10] : memref<16x64xf32, #tpu.memory_space<vmem>>, vector<16x64xf32>
    %cst_11 = arith.constant dense<0.000000e+00> : vector<16x64xf32>
    %7 = tpu.matmul %5, %6, %cst_11 {dimension_numbers = #tpu.dot_dimension_numbers<[1], [0], [0], [1], [0, 0, 1, 1], [], []>} : vector<16x16xf32>, vector<16x64xf32>, vector<16x64xf32> -> vector<16x64xf32>
    %c0_12 = arith.constant 0 : index
    %c0_13 = arith.constant 0 : index
    %8 = vector.load %arg11[%c0_12, %c0_13] : memref<1x64xf32, #tpu.memory_space<vmem>>, vector<1x64xf32>
    %9 = vector.broadcast %8 : vector<1x64xf32> to vector<16x64xf32>
    %10 = arith.addf %7, %9 : vector<16x64xf32>
    %c0_14 = arith.constant 0 : index
    %c0_15 = arith.constant 0 : index
    %11 = vector.load %arg12[%c0_14, %c0_15] : memref<64x16xf32, #tpu.memory_space<vmem>>, vector<64x16xf32>
    %cst_16 = arith.constant dense<0.000000e+00> : vector<16x16xf32>
    %12 = tpu.matmul %0, %11, %cst_16 {dimension_numbers = #tpu.dot_dimension_numbers<[1], [0], [0], [1], [0, 0, 1, 1], [], []>} : vector<16x64xf32>, vector<64x16xf32>, vector<16x16xf32> -> vector<16x16xf32>
    %c0_17 = arith.constant 0 : index
    %c0_18 = arith.constant 0 : index
    %13 = vector.load %arg13[%c0_17, %c0_18] : memref<16x32xf32, #tpu.memory_space<vmem>>, vector<16x32xf32>
    %cst_19 = arith.constant dense<0.000000e+00> : vector<16x32xf32>
    %14 = tpu.matmul %12, %13, %cst_19 {dimension_numbers = #tpu.dot_dimension_numbers<[1], [0], [0], [1], [0, 0, 1, 1], [], []>} : vector<16x16xf32>, vector<16x32xf32>, vector<16x32xf32> -> vector<16x32xf32>
    %c0_20 = arith.constant 0 : index
    %c0_21 = arith.constant 0 : index
    %15 = vector.load %arg14[%c0_20, %c0_21] : memref<1x32xf32, #tpu.memory_space<vmem>>, vector<1x32xf32>
    %16 = vector.broadcast %15 : vector<1x32xf32> to vector<16x32xf32>
    %17 = arith.addf %14, %16 : vector<16x32xf32>
    %c0_22 = arith.constant 0 : index
    %c0_23 = arith.constant 0 : index
    %18 = vector.load %arg15[%c0_22, %c0_23] : memref<64x32xf32, #tpu.memory_space<vmem>>, vector<64x32xf32>
    %cst_24 = arith.constant dense<0.000000e+00> : vector<16x32xf32>
    %19 = tpu.matmul %0, %18, %cst_24 {dimension_numbers = #tpu.dot_dimension_numbers<[1], [0], [0], [1], [0, 0, 1, 1], [], []>} : vector<16x64xf32>, vector<64x32xf32>, vector<16x32xf32> -> vector<16x32xf32>
    %c0_25 = arith.constant 0 : index
    %c0_26 = arith.constant 0 : index
    %20 = vector.load %arg3[%c0_25, %c0_26] : memref<16x64xf32, #tpu.memory_space<vmem>>, vector<16x64xf32>
    %21 = arith.mulf %10, %20 : vector<16x64xf32>
    %c0_27 = arith.constant 0 : index
    %c0_28 = arith.constant 0 : index
    %22 = vector.load %arg7[%c0_27, %c0_28] : memref<64x64xf32, #tpu.memory_space<vmem>>, vector<64x64xf32>
    %cst_29 = arith.constant dense<0.000000e+00> : vector<16x64xf32>
    %23 = tpu.matmul %10, %22, %cst_29 {dimension_numbers = #tpu.dot_dimension_numbers<[1], [0], [0], [1], [0, 0, 1, 1], [], []>} : vector<16x64xf32>, vector<64x64xf32>, vector<16x64xf32> -> vector<16x64xf32>
    %c0_30 = arith.constant 0 : index
    %c0_31 = arith.constant 0 : index
    %24 = vector.load %arg4[%c0_30, %c0_31] : memref<16x64xf32, #tpu.memory_space<vmem>>, vector<16x64xf32>
    %25 = arith.mulf %23, %24 : vector<16x64xf32>
    %26 = arith.addf %21, %25 : vector<16x64xf32>
    %c0_32 = arith.constant 0 : index
    %c0_33 = arith.constant 0 : index
    %27 = vector.load %arg5[%c0_32, %c0_33] : memref<16x32xf32, #tpu.memory_space<vmem>>, vector<16x32xf32>
    %28 = arith.mulf %17, %27 : vector<16x32xf32>
    %c0_34 = arith.constant 0 : index
    %c0_35 = arith.constant 0 : index
    %29 = vector.load %arg8[%c0_34, %c0_35] : memref<32x32xf32, #tpu.memory_space<vmem>>, vector<32x32xf32>
    %cst_36 = arith.constant dense<0.000000e+00> : vector<16x32xf32>
    %30 = tpu.matmul %17, %29, %cst_36 {dimension_numbers = #tpu.dot_dimension_numbers<[1], [0], [0], [1], [0, 0, 1, 1], [], []>} : vector<16x32xf32>, vector<32x32xf32>, vector<16x32xf32> -> vector<16x32xf32>
    %c0_37 = arith.constant 0 : index
    %c0_38 = arith.constant 0 : index
    %31 = vector.load %arg6[%c0_37, %c0_38] : memref<16x32xf32, #tpu.memory_space<vmem>>, vector<16x32xf32>
    %32 = arith.mulf %30, %31 : vector<16x32xf32>
    %33 = arith.addf %28, %32 : vector<16x32xf32>
    %c0_39 = arith.constant 0 : index
    %c0_40 = arith.constant 0 : index
    %c0_41 = arith.constant 0 : index
    %34 = vector.load %arg2[%c0_39, %c0_40, %c0_41] : memref<2x8x8xf32, #tpu.memory_space<vmem>>, vector<1x8x8xf32>
    %35 = vector.shape_cast %34 : vector<1x8x8xf32> to vector<8x8xf32>
    %cst_42 = arith.constant 0.000000e+00 : f32
    %36 = vector.broadcast %cst_42 : f32 to vector<8x16xf32>
    %37 = vector.extract_strided_slice %26 {offsets = [0, 0], sizes = [8, 16], strides = [1, 1]} : vector<16x64xf32> to vector<8x16xf32>
    %38 = vector.extract_strided_slice %33 {offsets = [0, 0], sizes = [8, 16], strides = [1, 1]} : vector<16x32xf32> to vector<8x16xf32>
    %39 = vector.extract_strided_slice %19 {offsets = [0, 0], sizes = [8, 16], strides = [1, 1]} : vector<16x32xf32> to vector<8x16xf32>
    %40 = tpu.transpose %38, [1, 0] : vector<8x16xf32> -> vector<16x8xf32>
    %cst_43 = arith.constant dense<0.000000e+00> : vector<8x8xf32>
    %41 = tpu.matmul %37, %40, %cst_43 {dimension_numbers = #tpu.dot_dimension_numbers<[1], [0], [0], [1], [0, 0, 1, 1], [], []>} : vector<8x16xf32>, vector<16x8xf32>, vector<8x8xf32> -> vector<8x8xf32>
    %42 = arith.addf %41, %35 : vector<8x8xf32>
    %cst_44 = arith.constant dense<0xFF800000> : vector<8xf32>
    %43 = vector.multi_reduction <maximumf>, %42, %cst_44 [1] : vector<8x8xf32> to vector<8xf32>
    %44 = vector.shape_cast %43 : vector<8xf32> to vector<8x1xf32>
    %45 = vector.broadcast %44 : vector<8x1xf32> to vector<8x8xf32>
    %46 = arith.subf %42, %45 : vector<8x8xf32>
    %47 = math.exp %46 : vector<8x8xf32>
    %cst_45 = arith.constant dense<0.000000e+00> : vector<8xf32>
    %48 = vector.multi_reduction <add>, %47, %cst_45 [1] : vector<8x8xf32> to vector<8xf32>
    %49 = vector.shape_cast %48 : vector<8xf32> to vector<8x1xf32>
    %50 = tpu.reciprocal %49 {approx = true} : vector<8x1xf32> -> vector<8x1xf32>
    %51 = vector.broadcast %50 : vector<8x1xf32> to vector<8x8xf32>
    %52 = arith.mulf %47, %51 : vector<8x8xf32>
    %cst_46 = arith.constant dense<0.000000e+00> : vector<8x16xf32>
    %53 = tpu.matmul %52, %39, %cst_46 {dimension_numbers = #tpu.dot_dimension_numbers<[1], [0], [0], [1], [0, 0, 1, 1], [], []>} : vector<8x8xf32>, vector<8x16xf32>, vector<8x16xf32> -> vector<8x16xf32>
    %54 = vector.extract_strided_slice %1 {offsets = [0, 0], sizes = [16, 16], strides = [1, 1]} : vector<64x16xf32> to vector<16x16xf32>
    %cst_47 = arith.constant dense<0.000000e+00> : vector<8x16xf32>
    %55 = tpu.matmul %53, %54, %cst_47 {dimension_numbers = #tpu.dot_dimension_numbers<[1], [0], [0], [1], [0, 0, 1, 1], [], []>} : vector<8x16xf32>, vector<16x16xf32>, vector<8x16xf32> -> vector<8x16xf32>
    %56 = arith.addf %36, %55 : vector<8x16xf32>
    %57 = vector.extract_strided_slice %26 {offsets = [0, 16], sizes = [8, 16], strides = [1, 1]} : vector<16x64xf32> to vector<8x16xf32>
    %58 = vector.extract_strided_slice %33 {offsets = [0, 0], sizes = [8, 16], strides = [1, 1]} : vector<16x32xf32> to vector<8x16xf32>
    %59 = vector.extract_strided_slice %19 {offsets = [0, 0], sizes = [8, 16], strides = [1, 1]} : vector<16x32xf32> to vector<8x16xf32>
    %60 = tpu.transpose %58, [1, 0] : vector<8x16xf32> -> vector<16x8xf32>
    %cst_48 = arith.constant dense<0.000000e+00> : vector<8x8xf32>
    %61 = tpu.matmul %57, %60, %cst_48 {dimension_numbers = #tpu.dot_dimension_numbers<[1], [0], [0], [1], [0, 0, 1, 1], [], []>} : vector<8x16xf32>, vector<16x8xf32>, vector<8x8xf32> -> vector<8x8xf32>
    %62 = arith.addf %61, %35 : vector<8x8xf32>
    %cst_49 = arith.constant dense<0xFF800000> : vector<8xf32>
    %63 = vector.multi_reduction <maximumf>, %62, %cst_49 [1] : vector<8x8xf32> to vector<8xf32>
    %64 = vector.shape_cast %63 : vector<8xf32> to vector<8x1xf32>
    %65 = vector.broadcast %64 : vector<8x1xf32> to vector<8x8xf32>
    %66 = arith.subf %62, %65 : vector<8x8xf32>
    %67 = math.exp %66 : vector<8x8xf32>
    %cst_50 = arith.constant dense<0.000000e+00> : vector<8xf32>
    %68 = vector.multi_reduction <add>, %67, %cst_50 [1] : vector<8x8xf32> to vector<8xf32>
    %69 = vector.shape_cast %68 : vector<8xf32> to vector<8x1xf32>
    %70 = tpu.reciprocal %69 {approx = true} : vector<8x1xf32> -> vector<8x1xf32>
    %71 = vector.broadcast %70 : vector<8x1xf32> to vector<8x8xf32>
    %72 = arith.mulf %67, %71 : vector<8x8xf32>
    %cst_51 = arith.constant dense<0.000000e+00> : vector<8x16xf32>
    %73 = tpu.matmul %72, %59, %cst_51 {dimension_numbers = #tpu.dot_dimension_numbers<[1], [0], [0], [1], [0, 0, 1, 1], [], []>} : vector<8x8xf32>, vector<8x16xf32>, vector<8x16xf32> -> vector<8x16xf32>
    %74 = vector.extract_strided_slice %1 {offsets = [16, 0], sizes = [16, 16], strides = [1, 1]} : vector<64x16xf32> to vector<16x16xf32>
    %cst_52 = arith.constant dense<0.000000e+00> : vector<8x16xf32>
    %75 = tpu.matmul %73, %74, %cst_52 {dimension_numbers = #tpu.dot_dimension_numbers<[1], [0], [0], [1], [0, 0, 1, 1], [], []>} : vector<8x16xf32>, vector<16x16xf32>, vector<8x16xf32> -> vector<8x16xf32>
    %76 = arith.addf %56, %75 : vector<8x16xf32>
    %77 = vector.extract_strided_slice %26 {offsets = [0, 32], sizes = [8, 16], strides = [1, 1]} : vector<16x64xf32> to vector<8x16xf32>
    %78 = vector.extract_strided_slice %33 {offsets = [0, 16], sizes = [8, 16], strides = [1, 1]} : vector<16x32xf32> to vector<8x16xf32>
    %79 = vector.extract_strided_slice %19 {offsets = [0, 16], sizes = [8, 16], strides = [1, 1]} : vector<16x32xf32> to vector<8x16xf32>
    %80 = tpu.transpose %78, [1, 0] : vector<8x16xf32> -> vector<16x8xf32>
    %cst_53 = arith.constant dense<0.000000e+00> : vector<8x8xf32>
    %81 = tpu.matmul %77, %80, %cst_53 {dimension_numbers = #tpu.dot_dimension_numbers<[1], [0], [0], [1], [0, 0, 1, 1], [], []>} : vector<8x16xf32>, vector<16x8xf32>, vector<8x8xf32> -> vector<8x8xf32>
    %82 = arith.addf %81, %35 : vector<8x8xf32>
    %cst_54 = arith.constant dense<0xFF800000> : vector<8xf32>
    %83 = vector.multi_reduction <maximumf>, %82, %cst_54 [1] : vector<8x8xf32> to vector<8xf32>
    %84 = vector.shape_cast %83 : vector<8xf32> to vector<8x1xf32>
    %85 = vector.broadcast %84 : vector<8x1xf32> to vector<8x8xf32>
    %86 = arith.subf %82, %85 : vector<8x8xf32>
    %87 = math.exp %86 : vector<8x8xf32>
    %cst_55 = arith.constant dense<0.000000e+00> : vector<8xf32>
    %88 = vector.multi_reduction <add>, %87, %cst_55 [1] : vector<8x8xf32> to vector<8xf32>
    %89 = vector.shape_cast %88 : vector<8xf32> to vector<8x1xf32>
    %90 = tpu.reciprocal %89 {approx = true} : vector<8x1xf32> -> vector<8x1xf32>
    %91 = vector.broadcast %90 : vector<8x1xf32> to vector<8x8xf32>
    %92 = arith.mulf %87, %91 : vector<8x8xf32>
    %cst_56 = arith.constant dense<0.000000e+00> : vector<8x16xf32>
    %93 = tpu.matmul %92, %79, %cst_56 {dimension_numbers = #tpu.dot_dimension_numbers<[1], [0], [0], [1], [0, 0, 1, 1], [], []>} : vector<8x8xf32>, vector<8x16xf32>, vector<8x16xf32> -> vector<8x16xf32>
    %94 = vector.extract_strided_slice %1 {offsets = [32, 0], sizes = [16, 16], strides = [1, 1]} : vector<64x16xf32> to vector<16x16xf32>
    %cst_57 = arith.constant dense<0.000000e+00> : vector<8x16xf32>
    %95 = tpu.matmul %93, %94, %cst_57 {dimension_numbers = #tpu.dot_dimension_numbers<[1], [0], [0], [1], [0, 0, 1, 1], [], []>} : vector<8x16xf32>, vector<16x16xf32>, vector<8x16xf32> -> vector<8x16xf32>
    %96 = arith.addf %76, %95 : vector<8x16xf32>
    %97 = vector.extract_strided_slice %26 {offsets = [0, 48], sizes = [8, 16], strides = [1, 1]} : vector<16x64xf32> to vector<8x16xf32>
    %98 = vector.extract_strided_slice %33 {offsets = [0, 16], sizes = [8, 16], strides = [1, 1]} : vector<16x32xf32> to vector<8x16xf32>
    %99 = vector.extract_strided_slice %19 {offsets = [0, 16], sizes = [8, 16], strides = [1, 1]} : vector<16x32xf32> to vector<8x16xf32>
    %100 = tpu.transpose %98, [1, 0] : vector<8x16xf32> -> vector<16x8xf32>
    %cst_58 = arith.constant dense<0.000000e+00> : vector<8x8xf32>
    %101 = tpu.matmul %97, %100, %cst_58 {dimension_numbers = #tpu.dot_dimension_numbers<[1], [0], [0], [1], [0, 0, 1, 1], [], []>} : vector<8x16xf32>, vector<16x8xf32>, vector<8x8xf32> -> vector<8x8xf32>
    %102 = arith.addf %101, %35 : vector<8x8xf32>
    %cst_59 = arith.constant dense<0xFF800000> : vector<8xf32>
    %103 = vector.multi_reduction <maximumf>, %102, %cst_59 [1] : vector<8x8xf32> to vector<8xf32>
    %104 = vector.shape_cast %103 : vector<8xf32> to vector<8x1xf32>
    %105 = vector.broadcast %104 : vector<8x1xf32> to vector<8x8xf32>
    %106 = arith.subf %102, %105 : vector<8x8xf32>
    %107 = math.exp %106 : vector<8x8xf32>
    %cst_60 = arith.constant dense<0.000000e+00> : vector<8xf32>
    %108 = vector.multi_reduction <add>, %107, %cst_60 [1] : vector<8x8xf32> to vector<8xf32>
    %109 = vector.shape_cast %108 : vector<8xf32> to vector<8x1xf32>
    %110 = tpu.reciprocal %109 {approx = true} : vector<8x1xf32> -> vector<8x1xf32>
    %111 = vector.broadcast %110 : vector<8x1xf32> to vector<8x8xf32>
    %112 = arith.mulf %107, %111 : vector<8x8xf32>
    %cst_61 = arith.constant dense<0.000000e+00> : vector<8x16xf32>
    %113 = tpu.matmul %112, %99, %cst_61 {dimension_numbers = #tpu.dot_dimension_numbers<[1], [0], [0], [1], [0, 0, 1, 1], [], []>} : vector<8x8xf32>, vector<8x16xf32>, vector<8x16xf32> -> vector<8x16xf32>
    %114 = vector.extract_strided_slice %1 {offsets = [48, 0], sizes = [16, 16], strides = [1, 1]} : vector<64x16xf32> to vector<16x16xf32>
    %cst_62 = arith.constant dense<0.000000e+00> : vector<8x16xf32>
    %115 = tpu.matmul %113, %114, %cst_62 {dimension_numbers = #tpu.dot_dimension_numbers<[1], [0], [0], [1], [0, 0, 1, 1], [], []>} : vector<8x16xf32>, vector<16x16xf32>, vector<8x16xf32> -> vector<8x16xf32>
    %116 = arith.addf %96, %115 : vector<8x16xf32>
    %cst_63 = arith.constant dense<0.000000e+00> : vector<8x64xf32>
    %117 = tpu.matmul %116, %2, %cst_63 {dimension_numbers = #tpu.dot_dimension_numbers<[1], [0], [0], [1], [0, 0, 1, 1], [], []>} : vector<8x16xf32>, vector<16x64xf32>, vector<8x64xf32> -> vector<8x64xf32>
    %118 = vector.broadcast %3 : vector<1x64xf32> to vector<8x64xf32>
    %119 = arith.addf %117, %118 : vector<8x64xf32>
    %c0_64 = arith.constant 0 : index
    %c0_65 = arith.constant 0 : index
    %120 = vector.load %arg19[%c0_64, %c0_65] : memref<16x64xf32, #tpu.memory_space<vmem>>, vector<8x64xf32>
    tpu.vector_store %arg19[%c0_64, %c0_65], %119 {strides = array<i32>} : memref<16x64xf32, #tpu.memory_space<vmem>>, vector<8x64xf32>,
    %c1 = arith.constant 1 : index
    %c0_66 = arith.constant 0 : index
    %c0_67 = arith.constant 0 : index
    %121 = vector.load %arg2[%c1, %c0_66, %c0_67] : memref<2x8x8xf32, #tpu.memory_space<vmem>>, vector<1x8x8xf32>
    %122 = vector.shape_cast %121 : vector<1x8x8xf32> to vector<8x8xf32>
    %cst_68 = arith.constant 0.000000e+00 : f32
    %123 = vector.broadcast %cst_68 : f32 to vector<8x16xf32>
    %124 = vector.extract_strided_slice %26 {offsets = [8, 0], sizes = [8, 16], strides = [1, 1]} : vector<16x64xf32> to vector<8x16xf32>
    %125 = vector.extract_strided_slice %33 {offsets = [8, 0], sizes = [8, 16], strides = [1, 1]} : vector<16x32xf32> to vector<8x16xf32>
    %126 = vector.extract_strided_slice %19 {offsets = [8, 0], sizes = [8, 16], strides = [1, 1]} : vector<16x32xf32> to vector<8x16xf32>
    %127 = tpu.transpose %125, [1, 0] : vector<8x16xf32> -> vector<16x8xf32>
    %cst_69 = arith.constant dense<0.000000e+00> : vector<8x8xf32>
    %128 = tpu.matmul %124, %127, %cst_69 {dimension_numbers = #tpu.dot_dimension_numbers<[1], [0], [0], [1], [0, 0, 1, 1], [], []>} : vector<8x16xf32>, vector<16x8xf32>, vector<8x8xf32> -> vector<8x8xf32>
    %129 = arith.addf %128, %122 : vector<8x8xf32>
    %cst_70 = arith.constant dense<0xFF800000> : vector<8xf32>
    %130 = vector.multi_reduction <maximumf>, %129, %cst_70 [1] : vector<8x8xf32> to vector<8xf32>
    %131 = vector.shape_cast %130 : vector<8xf32> to vector<8x1xf32>
    %132 = vector.broadcast %131 : vector<8x1xf32> to vector<8x8xf32>
    %133 = arith.subf %129, %132 : vector<8x8xf32>
    %134 = math.exp %133 : vector<8x8xf32>
    %cst_71 = arith.constant dense<0.000000e+00> : vector<8xf32>
    %135 = vector.multi_reduction <add>, %134, %cst_71 [1] : vector<8x8xf32> to vector<8xf32>
    %136 = vector.shape_cast %135 : vector<8xf32> to vector<8x1xf32>
    %137 = tpu.reciprocal %136 {approx = true} : vector<8x1xf32> -> vector<8x1xf32>
    %138 = vector.broadcast %137 : vector<8x1xf32> to vector<8x8xf32>
    %139 = arith.mulf %134, %138 : vector<8x8xf32>
    %cst_72 = arith.constant dense<0.000000e+00> : vector<8x16xf32>
    %140 = tpu.matmul %139, %126, %cst_72 {dimension_numbers = #tpu.dot_dimension_numbers<[1], [0], [0], [1], [0, 0, 1, 1], [], []>} : vector<8x8xf32>, vector<8x16xf32>, vector<8x16xf32> -> vector<8x16xf32>
    %141 = vector.extract_strided_slice %1 {offsets = [0, 0], sizes = [16, 16], strides = [1, 1]} : vector<64x16xf32> to vector<16x16xf32>
    %cst_73 = arith.constant dense<0.000000e+00> : vector<8x16xf32>
    %142 = tpu.matmul %140, %141, %cst_73 {dimension_numbers = #tpu.dot_dimension_numbers<[1], [0], [0], [1], [0, 0, 1, 1], [], []>} : vector<8x16xf32>, vector<16x16xf32>, vector<8x16xf32> -> vector<8x16xf32>
    %143 = arith.addf %123, %142 : vector<8x16xf32>
    %144 = vector.extract_strided_slice %26 {offsets = [8, 16], sizes = [8, 16], strides = [1, 1]} : vector<16x64xf32> to vector<8x16xf32>
    %145 = vector.extract_strided_slice %33 {offsets = [8, 0], sizes = [8, 16], strides = [1, 1]} : vector<16x32xf32> to vector<8x16xf32>
    %146 = vector.extract_strided_slice %19 {offsets = [8, 0], sizes = [8, 16], strides = [1, 1]} : vector<16x32xf32> to vector<8x16xf32>
    %147 = tpu.transpose %145, [1, 0] : vector<8x16xf32> -> vector<16x8xf32>
    %cst_74 = arith.constant dense<0.000000e+00> : vector<8x8xf32>
    %148 = tpu.matmul %144, %147, %cst_74 {dimension_numbers = #tpu.dot_dimension_numbers<[1], [0], [0], [1], [0, 0, 1, 1], [], []>} : vector<8x16xf32>, vector<16x8xf32>, vector<8x8xf32> -> vector<8x8xf32>
    %149 = arith.addf %148, %122 : vector<8x8xf32>
    %cst_75 = arith.constant dense<0xFF800000> : vector<8xf32>
    %150 = vector.multi_reduction <maximumf>, %149, %cst_75 [1] : vector<8x8xf32> to vector<8xf32>
    %151 = vector.shape_cast %150 : vector<8xf32> to vector<8x1xf32>
    %152 = vector.broadcast %151 : vector<8x1xf32> to vector<8x8xf32>
    %153 = arith.subf %149, %152 : vector<8x8xf32>
    %154 = math.exp %153 : vector<8x8xf32>
    %cst_76 = arith.constant dense<0.000000e+00> : vector<8xf32>
    %155 = vector.multi_reduction <add>, %154, %cst_76 [1] : vector<8x8xf32> to vector<8xf32>
    %156 = vector.shape_cast %155 : vector<8xf32> to vector<8x1xf32>
    %157 = tpu.reciprocal %156 {approx = true} : vector<8x1xf32> -> vector<8x1xf32>
    %158 = vector.broadcast %157 : vector<8x1xf32> to vector<8x8xf32>
    %159 = arith.mulf %154, %158 : vector<8x8xf32>
    %cst_77 = arith.constant dense<0.000000e+00> : vector<8x16xf32>
    %160 = tpu.matmul %159, %146, %cst_77 {dimension_numbers = #tpu.dot_dimension_numbers<[1], [0], [0], [1], [0, 0, 1, 1], [], []>} : vector<8x8xf32>, vector<8x16xf32>, vector<8x16xf32> -> vector<8x16xf32>
    %161 = vector.extract_strided_slice %1 {offsets = [16, 0], sizes = [16, 16], strides = [1, 1]} : vector<64x16xf32> to vector<16x16xf32>
    %cst_78 = arith.constant dense<0.000000e+00> : vector<8x16xf32>
    %162 = tpu.matmul %160, %161, %cst_78 {dimension_numbers = #tpu.dot_dimension_numbers<[1], [0], [0], [1], [0, 0, 1, 1], [], []>} : vector<8x16xf32>, vector<16x16xf32>, vector<8x16xf32> -> vector<8x16xf32>
    %163 = arith.addf %143, %162 : vector<8x16xf32>
    %164 = vector.extract_strided_slice %26 {offsets = [8, 32], sizes = [8, 16], strides = [1, 1]} : vector<16x64xf32> to vector<8x16xf32>
    %165 = vector.extract_strided_slice %33 {offsets = [8, 16], sizes = [8, 16], strides = [1, 1]} : vector<16x32xf32> to vector<8x16xf32>
    %166 = vector.extract_strided_slice %19 {offsets = [8, 16], sizes = [8, 16], strides = [1, 1]} : vector<16x32xf32> to vector<8x16xf32>
    %167 = tpu.transpose %165, [1, 0] : vector<8x16xf32> -> vector<16x8xf32>
    %cst_79 = arith.constant dense<0.000000e+00> : vector<8x8xf32>
    %168 = tpu.matmul %164, %167, %cst_79 {dimension_numbers = #tpu.dot_dimension_numbers<[1], [0], [0], [1], [0, 0, 1, 1], [], []>} : vector<8x16xf32>, vector<16x8xf32>, vector<8x8xf32> -> vector<8x8xf32>
    %169 = arith.addf %168, %122 : vector<8x8xf32>
    %cst_80 = arith.constant dense<0xFF800000> : vector<8xf32>
    %170 = vector.multi_reduction <maximumf>, %169, %cst_80 [1] : vector<8x8xf32> to vector<8xf32>
    %171 = vector.shape_cast %170 : vector<8xf32> to vector<8x1xf32>
    %172 = vector.broadcast %171 : vector<8x1xf32> to vector<8x8xf32>
    %173 = arith.subf %169, %172 : vector<8x8xf32>
    %174 = math.exp %173 : vector<8x8xf32>
    %cst_81 = arith.constant dense<0.000000e+00> : vector<8xf32>
    %175 = vector.multi_reduction <add>, %174, %cst_81 [1] : vector<8x8xf32> to vector<8xf32>
    %176 = vector.shape_cast %175 : vector<8xf32> to vector<8x1xf32>
    %177 = tpu.reciprocal %176 {approx = true} : vector<8x1xf32> -> vector<8x1xf32>
    %178 = vector.broadcast %177 : vector<8x1xf32> to vector<8x8xf32>
    %179 = arith.mulf %174, %178 : vector<8x8xf32>
    %cst_82 = arith.constant dense<0.000000e+00> : vector<8x16xf32>
    %180 = tpu.matmul %179, %166, %cst_82 {dimension_numbers = #tpu.dot_dimension_numbers<[1], [0], [0], [1], [0, 0, 1, 1], [], []>} : vector<8x8xf32>, vector<8x16xf32>, vector<8x16xf32> -> vector<8x16xf32>
    %181 = vector.extract_strided_slice %1 {offsets = [32, 0], sizes = [16, 16], strides = [1, 1]} : vector<64x16xf32> to vector<16x16xf32>
    %cst_83 = arith.constant dense<0.000000e+00> : vector<8x16xf32>
    %182 = tpu.matmul %180, %181, %cst_83 {dimension_numbers = #tpu.dot_dimension_numbers<[1], [0], [0], [1], [0, 0, 1, 1], [], []>} : vector<8x16xf32>, vector<16x16xf32>, vector<8x16xf32> -> vector<8x16xf32>
    %183 = arith.addf %163, %182 : vector<8x16xf32>
    %184 = vector.extract_strided_slice %26 {offsets = [8, 48], sizes = [8, 16], strides = [1, 1]} : vector<16x64xf32> to vector<8x16xf32>
    %185 = vector.extract_strided_slice %33 {offsets = [8, 16], sizes = [8, 16], strides = [1, 1]} : vector<16x32xf32> to vector<8x16xf32>
    %186 = vector.extract_strided_slice %19 {offsets = [8, 16], sizes = [8, 16], strides = [1, 1]} : vector<16x32xf32> to vector<8x16xf32>
    %187 = tpu.transpose %185, [1, 0] : vector<8x16xf32> -> vector<16x8xf32>
    %cst_84 = arith.constant dense<0.000000e+00> : vector<8x8xf32>
    %188 = tpu.matmul %184, %187, %cst_84 {dimension_numbers = #tpu.dot_dimension_numbers<[1], [0], [0], [1], [0, 0, 1, 1], [], []>} : vector<8x16xf32>, vector<16x8xf32>, vector<8x8xf32> -> vector<8x8xf32>
    %189 = arith.addf %188, %122 : vector<8x8xf32>
    %cst_85 = arith.constant dense<0xFF800000> : vector<8xf32>
    %190 = vector.multi_reduction <maximumf>, %189, %cst_85 [1] : vector<8x8xf32> to vector<8xf32>
    %191 = vector.shape_cast %190 : vector<8xf32> to vector<8x1xf32>
    %192 = vector.broadcast %191 : vector<8x1xf32> to vector<8x8xf32>
    %193 = arith.subf %189, %192 : vector<8x8xf32>
    %194 = math.exp %193 : vector<8x8xf32>
    %cst_86 = arith.constant dense<0.000000e+00> : vector<8xf32>
    %195 = vector.multi_reduction <add>, %194, %cst_86 [1] : vector<8x8xf32> to vector<8xf32>
    %196 = vector.shape_cast %195 : vector<8xf32> to vector<8x1xf32>
    %197 = tpu.reciprocal %196 {approx = true} : vector<8x1xf32> -> vector<8x1xf32>
    %198 = vector.broadcast %197 : vector<8x1xf32> to vector<8x8xf32>
    %199 = arith.mulf %194, %198 : vector<8x8xf32>
    %cst_87 = arith.constant dense<0.000000e+00> : vector<8x16xf32>
    %200 = tpu.matmul %199, %186, %cst_87 {dimension_numbers = #tpu.dot_dimension_numbers<[1], [0], [0], [1], [0, 0, 1, 1], [], []>} : vector<8x8xf32>, vector<8x16xf32>, vector<8x16xf32> -> vector<8x16xf32>
    %201 = vector.extract_strided_slice %1 {offsets = [48, 0], sizes = [16, 16], strides = [1, 1]} : vector<64x16xf32> to vector<16x16xf32>
    %cst_88 = arith.constant dense<0.000000e+00> : vector<8x16xf32>
    %202 = tpu.matmul %200, %201, %cst_88 {dimension_numbers = #tpu.dot_dimension_numbers<[1], [0], [0], [1], [0, 0, 1, 1], [], []>} : vector<8x16xf32>, vector<16x16xf32>, vector<8x16xf32> -> vector<8x16xf32>
    %203 = arith.addf %183, %202 : vector<8x16xf32>
    %cst_89 = arith.constant dense<0.000000e+00> : vector<8x64xf32>
    %204 = tpu.matmul %203, %2, %cst_89 {dimension_numbers = #tpu.dot_dimension_numbers<[1], [0], [0], [1], [0, 0, 1, 1], [], []>} : vector<8x16xf32>, vector<16x64xf32>, vector<8x64xf32> -> vector<8x64xf32>
    %205 = vector.broadcast %3 : vector<1x64xf32> to vector<8x64xf32>
    %206 = arith.addf %204, %205 : vector<8x64xf32>
    %c8 = arith.constant 8 : index
    %c0_90 = arith.constant 0 : index
    %207 = vector.load %arg19[%c8, %c0_90] : memref<16x64xf32, #tpu.memory_space<vmem>>, vector<8x64xf32>
    tpu.vector_store %arg19[%c8, %c0_90], %206 {strides = array<i32>} : memref<16x64xf32, #tpu.memory_space<vmem>>, vector<8x64xf32>,
    return
  }
  func.func @transform_0(%arg0: i32) -> (i32, i32) {
    %c0_i32 = arith.constant 0 : i32
    %c0_i32_0 = arith.constant 0 : i32
    %c0_i32_1 = arith.constant 0 : i32
    return %c0_i32, %c0_i32_0 : i32, i32
  }
  func.func @transform_1(%arg0: i32) -> (i32, i32, i32) {
    %c0_i32 = arith.constant 0 : i32
    %c0_i32_0 = arith.constant 0 : i32
    %c0_i32_1 = arith.constant 0 : i32
    %c0_i32_2 = arith.constant 0 : i32
    return %c0_i32, %c0_i32_0, %c0_i32_1 : i32, i32, i32
  }
  func.func @transform_2(%arg0: i32) -> (i32, i32) {
    %c0_i32 = arith.constant 0 : i32
    %c0_i32_0 = arith.constant 0 : i32
    %c0_i32_1 = arith.constant 0 : i32
    return %c0_i32, %c0_i32_0 : i32, i32
  }
  func.func @transform_3(%arg0: i32) -> (i32, i32) {
    %c0_i32 = arith.constant 0 : i32
    %c0_i32_0 = arith.constant 0 : i32
    %c0_i32_1 = arith.constant 0 : i32
    return %c0_i32, %c0_i32_0 : i32, i32
  }
  func.func @transform_4(%arg0: i32) -> (i32, i32) {
    %c0_i32 = arith.constant 0 : i32
    %c0_i32_0 = arith.constant 0 : i32
    %c0_i32_1 = arith.constant 0 : i32
    return %c0_i32, %c0_i32_0 : i32, i32
  }
  func.func @transform_5(%arg0: i32) -> (i32, i32) {
    %c0_i32 = arith.constant 0 : i32
    %c0_i32_0 = arith.constant 0 : i32
    %c0_i32_1 = arith.constant 0 : i32
    return %c0_i32, %c0_i32_0 : i32, i32
  }
  func.func @transform_6(%arg0: i32) -> (i32, i32) {
    %c0_i32 = arith.constant 0 : i32
    %c0_i32_0 = arith.constant 0 : i32
    %c0_i32_1 = arith.constant 0 : i32
    return %c0_i32, %c0_i32_0 : i32, i32
  }
  func.func @transform_7(%arg0: i32) -> (i32, i32) {
    %c0_i32 = arith.constant 0 : i32
    %c0_i32_0 = arith.constant 0 : i32
    %c0_i32_1 = arith.constant 0 : i32
    return %c0_i32, %c0_i32_0 : i32, i32
  }
  func.func @transform_8(%arg0: i32) -> (i32, i32) {
    %c0_i32 = arith.constant 0 : i32
    %c0_i32_0 = arith.constant 0 : i32
    %c0_i32_1 = arith.constant 0 : i32
    return %c0_i32, %c0_i32_0 : i32, i32
  }
  func.func @transform_9(%arg0: i32) -> (i32, i32) {
    %c0_i32 = arith.constant 0 : i32
    %c0_i32_0 = arith.constant 0 : i32
    %c0_i32_1 = arith.constant 0 : i32
    return %c0_i32, %c0_i32_0 : i32, i32
  }
  func.func @transform_10(%arg0: i32) -> (i32, i32) {
    %c0_i32 = arith.constant 0 : i32
    %c0_i32_0 = arith.constant 0 : i32
    %c0_i32_1 = arith.constant 0 : i32
    return %c0_i32, %c0_i32_0 : i32, i32
  }
  func.func @transform_11(%arg0: i32) -> (i32, i32) {
    %c0_i32 = arith.constant 0 : i32
    %c0_i32_0 = arith.constant 0 : i32
    %c0_i32_1 = arith.constant 0 : i32
    return %c0_i32, %c0_i32_0 : i32, i32
  }
  func.func @transform_12(%arg0: i32) -> (i32, i32) {
    %c0_i32 = arith.constant 0 : i32
    %c0_i32_0 = arith.constant 0 : i32
    %c0_i32_1 = arith.constant 0 : i32
    return %c0_i32, %c0_i32_0 : i32, i32
  }
  func.func @transform_13(%arg0: i32) -> (i32, i32) {
    %c0_i32 = arith.constant 0 : i32
    %c0_i32_0 = arith.constant 0 : i32
    %c0_i32_1 = arith.constant 0 : i32
    return %c0_i32, %c0_i32_0 : i32, i32
  }
  func.func @transform_14(%arg0: i32) -> (i32, i32) {
    %c0_i32 = arith.constant 0 : i32
    %c0_i32_0 = arith.constant 0 : i32
    %c0_i32_1 = arith.constant 0 : i32
    return %c0_i32, %c0_i32_0 : i32, i32
  }
  func.func @transform_15(%arg0: i32) -> (i32, i32) {
    %c0_i32 = arith.constant 0 : i32
    %c0_i32_0 = arith.constant 0 : i32
    %c0_i32_1 = arith.constant 0 : i32
    return %c0_i32, %c0_i32_0 : i32, i32
  }
  func.func @transform_16(%arg0: i32) -> (i32, i32) {
    %c0_i32 = arith.constant 0 : i32
    %c0_i32_0 = arith.constant 0 : i32
    %c0_i32_1 = arith.constant 0 : i32
    return %c0_i32, %c0_i32_0 : i32, i32
  }
  func.func @transform_17(%arg0: i32) -> (i32, i32) {
    %c0_i32 = arith.constant 0 : i32
    %c0_i32_0 = arith.constant 0 : i32
    %c0_i32_1 = arith.constant 0 : i32
    return %c0_i32, %c0_i32_0 : i32, i32
  }
  func.func @transform_18(%arg0: i32) -> (i32, i32) {
    %c0_i32 = arith.constant 0 : i32
    %c0_i32_0 = arith.constant 0 : i32
    %c0_i32_1 = arith.constant 0 : i32
    return %c0_i32, %c0_i32_0 : i32, i32
  }
}

</mosaic_0001>

<bundles_post_ra>
// kernel: tile.27
= control target key start
LH: loop header
LB: loop body
LE: loop exit
PB: predicated region body
PF: predicated region fallthrough
CT: control target
= control target key end

     0   :  { %vm68_vm0 = vcmask 1047556   ;;  %vm70_vm1 = vcmask 130048   ;;  %vm89_vm2 = vcmask 261248   ;;  %s195_s0 = inlined_call_operand.vmem [shape: f32[16,2,16], index: 0, kind: input, shape index: {}]   ;;  %s196_s1 = inlined_call_operand.vmem [shape: f32[16,32], index: 1, kind: output, shape index: {}]  }
   0x1   :  { %v110_v0 = vld [vmem:[%s195_s0 + $0xe] sm:$0x3]  ;;  %v111_v1 = vld [vmem:[%s195_s0 + $0xc] sm:$0x3]  ;;  %v112_v2 = vld [vmem:[%s195_s0 + $0xa] sm:$0x3] }
   0x2   :  { %39 = vst [vmem:[#allocation0 + $0x38] sm:$0x3] %v110_v0  ;;  %v113_v3 = vld [vmem:[%s195_s0 + $0x8] sm:$0x3]  ;;  %v114_v4 = vld [vmem:[%s195_s0 + $0x6] sm:$0x3] }
   0x3   :  { %43 = vst [vmem:[#allocation0 + $0x30] sm:$0x3] %v111_v1  ;;  %v115_v5 = vld [vmem:[%s195_s0 + $0x4] sm:$0x3]  ;;  %v116_v6 = vld [vmem:[%s195_s0 + $0x2] sm:$0x3] }
   0x4   :  { %47 = vst [vmem:[#allocation0 + $0x28] sm:$0x3] %v112_v2  ;;  %v64_v7 = vld [vmem:[%s195_s0] sm:$0x3]  ;;  %v102_v8 = vld [vmem:[%s195_s0 + $0x1e] sm:$0x3] }
   0x5   :  { %51 = vst [vmem:[#allocation0 + $0x20] sm:$0x3] %v113_v3  ;;  %v103_v9 = vld [vmem:[%s195_s0 + $0x1c] sm:$0x3]  ;;  %v104_v10 = vld [vmem:[%s195_s0 + $0x1a] sm:$0x3] }
   0x6   :  { %55 = vst [vmem:[#allocation0 + $0x18] sm:$0x3] %v114_v4  ;;  %v105_v11 = vld [vmem:[%s195_s0 + $0x18] sm:$0x3]  ;;  %v106_v12 = vld [vmem:[%s195_s0 + $0x16] sm:$0x3] }
   0x7   :  { %59 = vst [vmem:[#allocation0 + $0x10] sm:$0x3] %v115_v5  ;;  %v107_v13 = vld [vmem:[%s195_s0 + $0x14] sm:$0x3]  ;;  %v108_v14 = vld [vmem:[%s195_s0 + $0x12] sm:$0x3] }
   0x8   :  { %63 = vst [vmem:[#allocation0 + $0x8] sm:$0x3] %v116_v6  ;;  %v109_v15 = vld [vmem:[%s195_s0 + $0x10] sm:$0x3]  ;;  %s120_s0 = smov 16  }
   0x9   :  { %65 = vst [vmem:[#allocation0] sm:$0x3] %v64_v7 }
   0xa   :  { %7 = vst [vmem:[#allocation0 + $0x78] sm:$0x3] %v102_v8 }
   0xb   :  { %11 = vst [vmem:[#allocation0 + $0x70] sm:$0x3] %v103_v9 }
   0xc   :  { %15 = vst [vmem:[#allocation0 + $0x68] sm:$0x3] %v104_v10  ;;  %v84_v16 = vld [vmem:[#allocation0 + $0x1] ss:$8 sm:$0xf0]  }
   0xd   :  { %19 = vst [vmem:[#allocation0 + $0x60] sm:$0x3] %v105_v11  ;;  %v67_v23 = vld [vmem:[#allocation0] ss:$8 sm:$0xf0]  }
   0xe   :  { %23 = vst [vmem:[#allocation0 + $0x58] sm:$0x3] %v106_v12 }
   0xf   :  { %27 = vst [vmem:[#allocation0 + $0x50] sm:$0x3] %v107_v13 }
  0x10   :  { %v82_v17 = vld [vmem:[#allocation0 + $0x1] ss:$8 sm:$0xf]   ;;  %31 = vst [vmem:[#allocation0 + $0x48] sm:$0x3] %v108_v14 }
  0x11   :  { %v86_v18 = vsel %vm68_vm0, %v84_v16, %v82_v17  ;;  %35 = vst [vmem:[#allocation0 + $0x40] sm:$0x3] %v109_v15  ;;  %v66_v22 = vld [vmem:[#allocation0] ss:$8 sm:$0xf]  }
  0x12   :  { %87 = vrot.lane.b32.xlu0 %v86_v18, %s120_s0  ;;  %v69_v24 = vsel %vm68_vm0, %v67_v23, %v66_v22 }
  0x13   :  { %71 = vst.msk [vmem:[%s196_s1] sm:$0xff] %vm70_vm1, %v69_v24  }
  0x14   :  { %v94_v19 = vld [vmem:[#allocation0 + $0x41] ss:$8 sm:$0xf0]   ;;  %v75_v26 = vld [vmem:[#allocation0 + $0x40] ss:$8 sm:$0xf0]  }
  0x18   :  { %v92_v20 = vld [vmem:[#allocation0 + $0x41] ss:$8 sm:$0xf]   ;;  %v73_v25 = vld [vmem:[#allocation0 + $0x40] ss:$8 sm:$0xf]  }
  0x19   :  { %v96_v21 = vsel %vm68_vm0, %v94_v19, %v92_v20  ;;  %v77_v27 = vsel %vm68_vm0, %v75_v26, %v73_v25 }
  0x1a   :  { %97 = vrot.lane.b32.xlu0 %v96_v21, %s120_s0  ;;  %117 = vst.msk [vmem:[%s196_s1 + $0x8] sm:$0xff] %vm70_vm1, %v77_v27  }
  0x84   :  { %v88_v28 = vpop.permute.xlu0 %87  }
  0x85   :  { %90 = vst.msk [vmem:[%s196_s1] sm:$0xff] %vm89_vm2, %v88_v28  }
  0x8c   :  { %v98_v29 = vpop.permute.xlu0 %97  }
  0x8d   :  { %118 = vst.msk [vmem:[%s196_s1 + $0x8] sm:$0xff] %vm89_vm2, %v98_v29  }

// kernel: llama_attention_forward.1
= control target key start
LH: loop header
LB: loop body
LE: loop exit
PB: predicated region body
PF: predicated region fallthrough
CT: control target
= control target key end

     0   :  { %s1645_s0 = inlined_call_operand.vmem [shape: f32[16,64], index: 0, kind: input, shape index: {}]   ;;  %s1646_s1 = inlined_call_operand.vmem [shape: f32[2,8,8], index: 1, kind: input, shape index: {}]   ;;  %s1647_s2 = inlined_call_operand.vmem [shape: f32[16,64], index: 2, kind: input, shape index: {}]   ;;  %s1648_s3 = inlined_call_operand.vmem [shape: f32[16,64], index: 3, kind: input, shape index: {}]   ;;  %s1649_s4 = inlined_call_operand.vmem [shape: f32[16,32], index: 4, kind: input, shape index: {}]   ;;  %s1650_s5 = inlined_call_operand.vmem [shape: f32[16,32], index: 5, kind: input, shape index: {}]   ;;  %s1651_s6 = inlined_call_operand.vmem [shape: f32[64,64], index: 6, kind: input, shape index: {}]   ;;  %s1652_s7 = inlined_call_operand.vmem [shape: f32[32,32], index: 7, kind: input, shape index: {}]   ;;  %s1653_s8 = inlined_call_operand.vmem [shape: f32[64,16], index: 8, kind: input, shape index: {}]   ;;  %s1654_s9 = inlined_call_operand.vmem [shape: f32[16,64], index: 9, kind: input, shape index: {}]   ;;  %s1655_s10 = inlined_call_operand.vmem [shape: f32[1,64], index: 10, kind: input, shape index: {}]   ;;  %s1656_s11 = inlined_call_operand.vmem [shape: f32[64,16], index: 11, kind: input, shape index: {}]   ;;  %s1657_s12 = inlined_call_operand.vmem [shape: f32[16,32], index: 12, kind: input, shape index: {}]   ;;  %s1658_s13 = inlined_call_operand.vmem [shape: f32[1,32], index: 13, kind: input, shape index: {}]   ;;  %s1659_s14 = inlined_call_operand.vmem [shape: f32[64,32], index: 14, kind: input, shape index: {}]   ;;  %s1660_s15 = inlined_call_operand.vmem [shape: f32[64,16], index: 15, kind: input, shape index: {}]   ;;  %s1661_s16 = inlined_call_operand.vmem [shape: f32[16,64], index: 16, kind: input, shape index: {}]   ;;  %s1662_s17 = inlined_call_operand.vmem [shape: f32[1,64], index: 17, kind: input, shape index: {}]   ;;  %s1663_s18 = inlined_call_operand.hbm [shape: f32[16,64], index: 18, kind: output, shape index: {}]  }
   0x1   :  { %1667 = sst [smem:[#allocation5_spill]] %s1645_s0 }
   0x2   :  { %1668 = sst [smem:[#allocation6_spill]] %s1646_s1 }
   0x3   :  { %1669 = sst [smem:[#allocation7_spill]] %s1647_s2 }
   0x4   :  { %v80_v0 = vld [vmem:[%s1653_s8 + $0x38] sm:$0xff]  ;;  %v79_v2 = vld [vmem:[%s1653_s8 + $0x30] sm:$0xff]  ;;  %v78_v4 = vld [vmem:[%s1653_s8 + $0x28] sm:$0xff] }
   0x5   :  { %v154_v1 = vld [vmem:[%s1656_s11 + $0x38] sm:$0xff]  ;;  %96 = vmatpush.msra.mxu0 %v80_v0  ;;  %v153_v3 = vld [vmem:[%s1656_s11 + $0x30] sm:$0xff]  ;;  %v152_v5 = vld [vmem:[%s1656_s11 + $0x28] sm:$0xff] }
   0x6   :  { %163 = vmatpush.msra.mxu2 %v154_v1  ;;  %v77_v6 = vld [vmem:[%s1653_s8 + $0x20] sm:$0xff]  ;;  %v76_v8 = vld [vmem:[%s1653_s8 + $0x18] sm:$0xff]  ;;  %v112_v10 = vld [vmem:[%s1654_s9 + $0x8] sm:$0xff] }
   0x7   :  { %97 = vmatpush.msra.mxu0 %v79_v2  ;;  %v151_v7 = vld [vmem:[%s1656_s11 + $0x20] sm:$0xff]  ;;  %v150_v9 = vld [vmem:[%s1656_s11 + $0x18] sm:$0xff] }
   0x8   :  { %164 = vmatpush.msra.mxu2 %v153_v3 }
   0x9   :  { %98 = vmatpush.msra.mxu0 %v78_v4 }
   0xa   :  { %165 = vmatpush.msra.mxu2 %v152_v5 }
   0xb   :  { %99 = vmatpush.msra.mxu0 %v77_v6 }
   0xc   :  { %166 = vmatpush.msra.mxu2 %v151_v7 }
   0xd   :  { %23 = vsyncpa [#allocation3], 0  ;;  %v75_v11 = vld [vmem:[%s1653_s8 + $0x10] sm:$0xff]  ;;  %138 = vmatpush.msra.mxu1 %v112_v10  ;;  %100 = vmatpush.msra.mxu0 %v76_v8  ;;  %v74_v13 = vld [vmem:[%s1653_s8 + $0x8] sm:$0xff]  ;;  %s1670_s1 = sld [smem:[#allocation5_spill]]  ;;  %vm81_vm0 = vcmask 523264  }
   0xe   :  { %v149_v12 = vld [vmem:[%s1656_s11 + $0x10] sm:$0xff]  ;;  %167 = vmatpush.msra.mxu2 %v150_v9  ;;  %v148_v14 = vld [vmem:[%s1656_s11 + $0x8] sm:$0xff]  ;;  %v73_v15 = vld [vmem:[%s1653_s8] sm:$0xff]  ;;  %vm117_vm1 = vcmask 130048   ;;  %vm299_vm2 = vcmask 261120   ;;  %s1196_s21 = smov 80  }
   0xf   :  { %101 = vmatpush.msra.mxu0 %v75_v11  ;;  %v147_v16 = vld [vmem:[%s1656_s11] sm:$0xff]  ;;  %v179_v20 = vld [vmem:[%s1657_s12 + $0x8] sm:$0xff]  ;;  %v255_v22 = vld [vmem:[%s1651_s6 + $0x38] sm:$0xff]  ;;  %s1197_s22 = smov 112   ;;  %s1198_s2 = smov 96   ;;  %vm362_vm3 = vcmask 64512  }
  0x10   :  { %168 = vmatpush.msra.mxu2 %v149_v12  ;;  %v111_v19 = vld [vmem:[%s1654_s9] sm:$0xff]  ;;  %204 = vmatpush.msra.mxu3 %v179_v20  ;;  %v254_v23 = vld [vmem:[%s1651_s6 + $0x30] sm:$0xff]  ;;  %v253_v24 = vld [vmem:[%s1651_s6 + $0x28] sm:$0xff]  ;;  %s1672_s9 = sld [smem:[#allocation6_spill]]  ;;  %s1068_s28 = sshll.u32 %s1663_s18, 4  ;;  %s1069_s28 = int_to_ptr.hbm [resolvable:$true] %s1068_s28 }
  0x11   :  { %102 = vmatpush.msra.mxu0 %v74_v13  ;;  %139 = vmatpush.msra.mxu1 %v111_v19  ;;  %v178_v21 = vld [vmem:[%s1657_s12] sm:$0xff]  ;;  %v251_v26 = vld [vmem:[%s1651_s6 + $0x18] sm:$0xff]  ;;  %v250_v27 = vld [vmem:[%s1651_s6 + $0x10] sm:$0xff]  ;;  %s1671_s12 = sld [smem:[#allocation7_spill]]  ;;  %s1201_s29 = smov 8  }
  0x12   :  { %169 = vmatpush.msra.mxu2 %v148_v14  ;;  %205 = vmatpush.msra.mxu3 %v178_v21  ;;  %v252_v25 = vld [vmem:[%s1651_s6 + $0x20] sm:$0xff]  ;;  %v249_v32 = vld [vmem:[%s1651_s6 + $0x8] sm:$0xff]  ;;  %v298_v34 = vld [vmem:[%s1652_s7 + $0x18] sm:$0xff] }
  0x13   :  { %v1351_v17 = vld [vmem:[%s1670_s1] sm:$0xff]  ;;  %103 = vmatpush.msra.mxu0 %v73_v15  ;;  %v1360_v18 = vld [vmem:[%s1670_s1 + $0x8] sm:$0xff]  ;;  %v297_v35 = vld [vmem:[%s1652_s7 + $0x10] sm:$0xff] }
  0x14   :  { %170 = vmatpush.msra.mxu2 %v147_v16  ;;  %1080 = vmatmul.msk.f32.vlgmr.msra.gmra.mxu0 %vm81_vm0, %v1351_v17  ;;  %v248_v33 = vld [vmem:[%s1651_s6] sm:$0xff]  ;;  %v296_v36 = vld [vmem:[%s1652_s7 + $0x8] sm:$0xff]  ;;  %v220_v6 = vld [vmem:[%s1659_s14 + $0x38] sm:$0xff]  ;;  %s1200_s6 = smov 128  }
  0x15   :  { %1084 = vmatmul.msk.f32.vlgmr.msra.gmra.mxu2 %vm81_vm0, %v1351_v17  ;;  %270 = vmatpush.msrb.mxu3 %v255_v22  ;;  %v295_v37 = vld [vmem:[%s1652_s7] sm:$0xff]  ;;  %v1451_v60 = vld [vmem:[%s1660_s15 + $0x8] sm:$0xff]  ;;  %v219_v7 = vld [vmem:[%s1659_s14 + $0x30] sm:$0xff] }
  0x16   :  { %318 = vmatpush.msrb.mxu0 %v298_v34  ;;  %v1135_v38 = vld [vmem:[%s1655_s10] ss:$0 sm:$0xff]  ;;  %229 = vmatpush.msrb.mxu1 %v220_v6  ;;  %v218_v8 = vld [vmem:[%s1659_s14 + $0x28] sm:$0xff]  ;;  %v216_v10 = vld [vmem:[%s1659_s14 + $0x18] sm:$0xff] }
  0x17   :  { %271 = vmatpush.msrb.mxu3 %v254_v23  ;;  %v1136_v42 = vld [vmem:[%s1658_s13] ss:$0 sm:$0xff]  ;;  %v215_v11 = vld [vmem:[%s1659_s14 + $0x10] sm:$0xff]  ;;  %v214_v12 = vld [vmem:[%s1659_s14 + $0x8] sm:$0xff] }
  0x18   :  { %319 = vmatpush.msrb.mxu0 %v297_v35  ;;  %v244_v48 = vld [vmem:[%s1671_s12] sm:$0xff]  ;;  %230 = vmatpush.msrb.mxu1 %v219_v7 }
  0x19   :  { %272 = vmatpush.msrb.mxu3 %v253_v24  ;;  %v285_v49 = vld [vmem:[%s1648_s3] sm:$0xff] }
  0x1a   :  { %320 = vmatpush.msrb.mxu0 %v296_v36  ;;  %v291_v54 = vld [vmem:[%s1649_s4] sm:$0xff]  ;;  %231 = vmatpush.msrb.mxu1 %v218_v8 }
  0x1b   :  { %273 = vmatpush.msrb.mxu3 %v252_v25  ;;  %v329_v55 = vld [vmem:[%s1650_s5] sm:$0xff]  ;;  %v330_v25 = vld [vmem:[%s1650_s5 + $0x8] sm:$0xff] }
  0x1c   :  { %1081 = vmatmul.msk.f32.gmra.mxu0 %vm81_vm0, %v1360_v18  ;;  %v1457_v61 = vld [vmem:[%s1660_s15] sm:$0xff] }
  0x1d   :  { %1085 = vmatmul.msk.f32.gmra.mxu2 %vm81_vm0, %v1360_v18  ;;  %274 = vmatpush.msrb.mxu3 %v251_v26  ;;  %v1467_v2 = vld [vmem:[%s1672_s9] sm:$0xff]  ;;  %v292_v26 = vld [vmem:[%s1649_s4 + $0x8] sm:$0xff] }
  0x1e   :  { %321 = vmatpush.msrb.mxu0 %v295_v37  ;;  %v217_v9 = vld [vmem:[%s1659_s14 + $0x20] sm:$0xff] }
  0x1f   :  { %275 = vmatpush.msrb.mxu3 %v250_v27  ;;  %232 = vmatpush.msrb.mxu1 %v217_v9  ;;  %v213_v13 = vld [vmem:[%s1659_s14] sm:$0xff] }
  0x21   :  { %276 = vmatpush.msrb.mxu3 %v249_v32  ;;  %233 = vmatpush.msrb.mxu1 %v216_v10 }
  0x23   :  { %277 = vmatpush.msrb.mxu3 %v248_v33  ;;  %234 = vmatpush.msrb.mxu1 %v215_v11  ;;  %v286_v33 = vld [vmem:[%s1648_s3 + $0x8] sm:$0xff] }
  0x25   :  { %235 = vmatpush.msrb.mxu1 %v214_v12 }
  0x27   :  { %236 = vmatpush.msrb.mxu1 %v213_v13 }
  0x91   :  { %v105_v28 = vpop.f32.mrf.mxu0 }
  0x92   :  { %1082 = vmatmul.msk.f32.vlgmr.msra.gmra.mxu1 %vm117_vm1, %v105_v28 }
  0x98   :  { %v172_v29 = vpop.f32.mrf.mxu2 }
  0x99   :  { %1086 = vmatmul.msk.f32.vlgmr.msra.gmra.mxu3 %vm117_vm1, %v172_v29  ;;  %v108_v30 = vpop.f32.mrf.mxu0 }
  0x9a   :  { %1083 = vmatmul.msk.f32.gmra.mxu1 %vm117_vm1, %v108_v30 }
  0xa0   :  { %v175_v31 = vpop.f32.mrf.mxu2 }
  0xa1   :  { %1087 = vmatmul.msk.f32.gmra.mxu3 %vm117_vm1, %v175_v31  ;;  %v245_v31 = vld [vmem:[%s1671_s12 + $0x8] sm:$0xff] }
  0xa2   :  { %1088 = vmatmul.msk.f32.vlgmr.msrb.gmra.mxu1 %vm81_vm0, %v1351_v17 }
  0xaa   :  { %1089 = vmatmul.msk.f32.gmra.mxu1 %vm81_vm0, %v1360_v18 }
 0x10f   :  { %v141_v39 = vpop.f32.mrf.mxu1 }
 0x110   :  { %v142_v40 = vadd.f32 %v1135_v38, %v141_v39 }
 0x112   :  { %1090 = vmatmul.msk.f32.vlgmr.msrb.gmra.mxu3 %vm81_vm0, %v142_v40  ;;  %v246_v51 = vmul.f32 %v244_v48, %v142_v40 }
 0x117   :  { %v144_v41 = vpop.f32.mrf.mxu1 }
 0x118   :  { %v1422_v43 = vadd.f32 %v1135_v38, %v144_v41 }
 0x11a   :  { %1091 = vmatmul.msk.f32.gmra.mxu3 %vm81_vm0, %v1422_v43  ;;  %v247_v34 = vmul.f32 %v245_v31, %v1422_v43  ;;  %v64_v31 = vld [vmem:[%s1660_s15 + $0x10] sm:$0xff] }
 0x11c   :  { %v207_v44 = vpop.f32.mrf.mxu3 }
 0x11d   :  { %v208_v45 = vadd.f32 %v1136_v42, %v207_v44 }
 0x11f   :  { %1092 = vmatmul.msk.f32.vlgmr.msrb.gmra.mxu0 %vm299_vm2, %v208_v45  ;;  %v293_v57 = vmul.f32 %v291_v54, %v208_v45  ;;  %v238_v21 = vpop.f32.mrf.mxu1 }
 0x120   :  { %392 = vmatpush.msra.mxu1 %v238_v21 }
 0x124   :  { %v210_v46 = vpop.f32.mrf.mxu3 }
 0x125   :  { %v1426_v47 = vadd.f32 %v1136_v42, %v210_v46  ;;  %v1534_v42 = vld [vmem:[%s1672_s9 + $0x8] sm:$0xff] }
 0x127   :  { %1093 = vmatmul.msk.f32.gmra.mxu0 %vm299_vm2, %v1426_v47  ;;  %v1501_v17 = vpop.f32.mrf.mxu1  ;;  %v294_v28 = vmul.f32 %v292_v26, %v1426_v47 }
 0x195   :  { %v279_v50 = vpop.f32.mrf.mxu3 }
 0x196   :  { %v287_v52 = vmul.f32 %v285_v49, %v279_v50 }
 0x198   :  { %v289_v53 = vadd.f32 %v287_v52, %v246_v51 }
 0x19a   :  { %591 = vrot.lane.b32.xlu2 %v289_v53, %s1196_s21  ;;  %397 = vrot.lane.b32.xlu1 %v289_v53, %s1197_s22 }
 0x19c   :  { %v323_v56 = vpop.f32.mrf.mxu0 }
 0x19d   :  { %v331_v58 = vmul.f32 %v329_v55, %v323_v56  ;;  %v282_v32 = vpop.f32.mrf.mxu3 }
 0x19e   :  { %v288_v35 = vmul.f32 %v286_v33, %v282_v32  ;;  %v66_v32 = vld [vmem:[%s1660_s15 + $0x20] sm:$0xff] }
 0x19f   :  { %v333_v59 = vadd.f32 %v331_v58, %v293_v57 }
 0x1a0   :  { %v1523_v36 = vadd.f32 %v288_v35, %v247_v34  ;;  %v1600_v34 = vld [vmem:[%s1661_s16 + $0x8] sm:$0xff] }
 0x1a1   :  { %1094 = vmatpush.xpose.msk.msrb.mxu2 %vm117_vm1, %v333_v59  ;;  %1097 = vmatpush.xpose.msk.msra.mxu3 %vm117_vm1, %v333_v59 }
 0x1a2   :  { %501 = vrot.lane.b32.xlu2 %v289_v53, %s1198_s2  ;;  %503 = vrot.lane.b32.xlu1 %v333_v59, %s1197_s22 }
 0x1a4   :  { %1095 = vmatmul.msk.f32.vlgmr.msrb.gmra.mxu2 %vm117_vm1, %v289_v53  ;;  %v326_v18 = vpop.f32.mrf.mxu0 }
 0x1a5   :  { %495 = vmatpush.msrb.mxu3 %v1451_v60  ;;  %450 = vmatpush.msra.mxu2 %v238_v21  ;;  %v332_v27 = vmul.f32 %v330_v25, %v326_v18  ;;  %v1571_v18 = vld [vmem:[%s1660_s15 + $0x30] sm:$0xff] }
 0x1a7   :  { %496 = vmatpush.msrb.mxu3 %v1457_v61  ;;  %v1510_v29 = vadd.f32 %v332_v27, %v294_v28 }
 0x1f4   :  { %v592_v63 = vpop.permute.xlu2 %591 }
 0x1fc   :  { %v502_v1 = vpop.permute.xlu2 %501 }
 0x20c   :  { %v398_v62 = vpop.permute.xlu1 %397 }
 0x20d   :  { %1098 = vmatmul.msk.f32.vlgmr.msra.gmra.mxu3 %vm117_vm1, %v398_v62 }
 0x214   :  { %v504_v0 = vpop.permute.xlu1 %503 }
 0x215   :  { %1102 = vmatpush.xpose.msk.msra.mxu0 %vm117_vm1, %v504_v0  ;;  %1106 = vmatpush.xpose.msk.msra.mxu3 %vm117_vm1, %v504_v0 }
 0x218   :  { %1103 = vmatmul.msk.f32.vlgmr.msra.gmra.mxu0 %vm117_vm1, %v502_v1 }
 0x227   :  { %v359_v3 = vpop.f32.mrf.mxu2 }
 0x228   :  { %v360_v4 = vadd.f32 %v359_v3, %v1467_v2 }
 0x22a   :  { %v363_v5 = vsel %vm362_vm3, %v360_v4, -inf }
 0x22b   :  { %364 = vmax.xlane.f32.xlu0 %v363_v5 }
 0x290   :  { %v418_v37 = vpop.f32.mrf.mxu3 }
 0x291   :  { %v419_v57 = vadd.f32 %v418_v37, %v1467_v2  ;;  %v1606_v37 = vld [vmem:[%s1661_s16] sm:$0xff] }
 0x293   :  { %v421_v1 = vsel %vm362_vm3, %v419_v57, -inf }
 0x295   :  { %v526_v46 = vpop.f32.mrf.mxu0 }
 0x296   :  { %v527_v47 = vadd.f32 %v526_v46, %v1467_v2 }
 0x298   :  { %v529_v48 = vsel %vm362_vm3, %v527_v47, -inf }
 0x29e   :  { %v365_v14 = vpop.xlane.xlu0 %364 }
 0x29f   :  { %v366_v15 = vsub.f32 %v360_v4, %v365_v14 }
 0x2a1   :  { %v367_v16 = vmul.f32 1.442695, %v366_v15 }
 0x2a3   :  { %1138 = vpow2.f32 %v367_v16 }
 0x2a9   :  { %v1139_v19 = vpop.eup %1138 }
 0x2aa   :  { %v369_v20 = vsel %vm362_vm3, %v1139_v19, 0.0 }
 0x2ab   :  { %370 = vadd.xlane.f32.xlu0 %v369_v20 }
 0x31e   :  { %v371_v22 = vpop.xlane.xlu0 %370 }
 0x31f   :  { %1140 = vrcp.f32 %v371_v22 }
 0x325   :  { %v1141_v23 = vpop.eup %1140 }
 0x326   :  { %v373_v24 = vmul.f32 %v1141_v23, %v1139_v19 }
 0x328   :  { %1096 = vmatmul.msk.f32.vlgmr.msra.gmra.mxu1 %vm362_vm3, %v373_v24  ;;  %v1564_v24 = vld [vmem:[%s1660_s15 + $0x38] sm:$0xff] }
 0x3a5   :  { %v394_v30 = vpop.f32.mrf.mxu1 }
 0x3a6   :  { %1101 = vmatmul.msk.f32.vlgmr.msrb.gmra.mxu3 %vm117_vm1, %v394_v30  ;;  %v65_v30 = vld [vmem:[%s1660_s15 + $0x18] sm:$0xff] }
 0x3a7   :  { %1112 = vmatpush.xpose.msk.msrb.mxu3 %vm117_vm1, %v1510_v29  ;;  %472 = vmatpush.msrb.mxu1 %v65_v30 }
 0x3a9   :  { %473 = vmatpush.msrb.mxu1 %v64_v31 }
 0x3ae   :  { %1107 = vmatmul.msk.f32.vlgmr.msra.gmra.mxu3 %vm117_vm1, %v592_v63 }
 0x3af   :  { %837 = vmatpush.msra.mxu3 %v65_v30 }
 0x3b1   :  { %838 = vmatpush.msra.mxu3 %v64_v31 }
 0x3b6   :  { %1113 = vmatmul.msk.f32.vlgmr.msrb.gmra.mxu3 %vm117_vm1, %v1523_v36 }
 0x429   :  { %v1527_v38 = vpop.f32.mrf.mxu3 }
 0x431   :  { %v612_v39 = vpop.f32.mrf.mxu3 }
 0x432   :  { %v613_v40 = vadd.f32 %v612_v39, %v1467_v2 }
 0x434   :  { %v615_v41 = vsel %vm362_vm3, %v613_v40, -inf }
 0x435   :  { %616 = vmax.xlane.f32.xlu0 %v615_v41 }
 0x439   :  { %v725_v43 = vpop.f32.mrf.mxu3 }
 0x43a   :  { %v726_v44 = vadd.f32 %v1534_v42, %v725_v43 }
 0x43c   :  { %v728_v45 = vsel %vm362_vm3, %v726_v44, -inf }
 0x43d   :  { %729 = vmax.xlane.f32.xlu1 %v728_v45 }
 0x445   :  { %530 = vmax.xlane.f32.xlu1 %v529_v48 }
 0x449   :  { %541 = vrot.lane.b32.xlu0 %v238_v21, %s1197_s22 }
 0x4a8   :  { %v617_v49 = vpop.xlane.xlu0 %616 }
 0x4a9   :  { %v618_v50 = vsub.f32 %v613_v40, %v617_v49 }
 0x4ab   :  { %v619_v51 = vmul.f32 1.442695, %v618_v50 }
 0x4ad   :  { %1142 = vpow2.f32 %v619_v51 }
 0x4b0   :  { %v730_v52 = vpop.xlane.xlu1 %729 }
 0x4b1   :  { %v731_v53 = vsub.f32 %v726_v44, %v730_v52 }
 0x4b3   :  { %v1143_v54 = vpop.eup %1142  ;;  %v732_v55 = vmul.f32 1.442695, %v731_v53 }
 0x4b4   :  { %v621_v56 = vsel %vm362_vm3, %v1143_v54, 0.0 }
 0x4b5   :  { %1144 = vpow2.f32 %v732_v55  ;;  %622 = vadd.xlane.f32.xlu2 %v621_v56 }
 0x4b8   :  { %v531_v58 = vpop.xlane.xlu1 %530 }
 0x4b9   :  { %v532_v59 = vsub.f32 %v527_v47, %v531_v58 }
 0x4bb   :  { %v1145_v62 = vpop.eup %1144  ;;  %v533_v63 = vmul.f32 1.442695, %v532_v59  ;;  %v542_v0 = vpop.permute.xlu0 %541 }
 0x4bc   :  { %562 = vmatpush.msrb.mxu2 %v542_v0  ;;  %644 = vmatpush.msrb.mxu0 %v542_v0  ;;  %v734_v3 = vsel %vm362_vm3, %v1145_v62, 0.0 }
 0x4bd   :  { %1146 = vpow2.f32 %v533_v63  ;;  %422 = vmax.xlane.f32.xlu2 %v421_v1  ;;  %735 = vadd.xlane.f32.xlu0 %v734_v3 }
 0x4be   :  { %757 = vmatpush.msra.mxu0 %v1501_v17 }
 0x4c3   :  { %v1147_v4 = vpop.eup %1146 }
 0x4c4   :  { %v535_v5 = vsel %vm362_vm3, %v1147_v4, 0.0 }
 0x4c5   :  { %536 = vadd.xlane.f32.xlu1 %v535_v5 }
 0x4d1   :  { %866 = vrot.lane.b32.xlu0 %v1523_v36, %s1198_s2 }
 0x4de   :  { %868 = vrot.lane.b32.xlu1 %v1510_v29, %s1197_s22 }
 0x528   :  { %v623_v2 = vpop.xlane.xlu2 %622 }
 0x529   :  { %1148 = vrcp.f32 %v623_v2 }
 0x52f   :  { %v1149_v6 = vpop.eup %1148 }
 0x530   :  { %v625_v7 = vmul.f32 %v1149_v6, %v1143_v54  ;;  %v423_v8 = vpop.xlane.xlu2 %422  ;;  %v736_v10 = vpop.xlane.xlu0 %735  ;;  %v1137_v6 = vld [vmem:[%s1662_s17] ss:$0 sm:$0xff]  ;;  %s1199_s17 = smov [#allocation2]  }
 0x531   :  { %v424_v9 = vsub.f32 %v419_v57, %v423_v8  ;;  %1150 = vrcp.f32 %v736_v10 }
 0x532   :  { %1108 = vmatmul.msk.f32.vlgmr.msrb.gmra.mxu0 %vm362_vm3, %v625_v7 }
 0x533   :  { %v425_v11 = vmul.f32 1.442695, %v424_v9  ;;  %860 = vmatpush.msrb.mxu0 %v1451_v60 }
 0x535   :  { %1152 = vpow2.f32 %v425_v11  ;;  %861 = vmatpush.msrb.mxu0 %v1457_v61 }
 0x537   :  { %v1151_v12 = vpop.eup %1150 }
 0x538   :  { %v738_v13 = vmul.f32 %v1151_v12, %v1145_v62  ;;  %v537_v16 = vpop.xlane.xlu1 %536 }
 0x53a   :  { %1114 = vmatmul.msk.f32.vlgmr.msra.gmra.mxu0 %vm362_vm3, %v738_v13 }
 0x53b   :  { %v1153_v14 = vpop.eup %1152 }
 0x53c   :  { %v427_v15 = vsel %vm362_vm3, %v1153_v14, 0.0 }
 0x53d   :  { %428 = vadd.xlane.f32.xlu2 %v427_v15 }
 0x543   :  { %v867_v28 = vpop.permute.xlu0 %866 }
 0x550   :  { %v869_v19 = vpop.permute.xlu1 %868 }
 0x551   :  { %1124 = vmatpush.xpose.msk.msra.mxu0 %vm117_vm1, %v869_v19 }
 0x555   :  { %762 = vrot.lane.b32.xlu2 %v1523_v36, %s1197_s22 }
 0x55d   :  { %956 = vrot.lane.b32.xlu2 %v1523_v36, %s1196_s21 }
 0x5af   :  { %v646_v60 = vpop.f32.mrf.mxu0 }
 0x5b0   :  { %v429_v61 = vpop.xlane.xlu2 %428 }
 0x5b1   :  { %1154 = vrcp.f32 %v429_v61 }
 0x5b2   :  { %1156 = vrcp.f32 %v537_v16 }
 0x5b7   :  { %v1155_v20 = vpop.eup %1154  ;;  %v759_v22 = vpop.f32.mrf.mxu0 }
 0x5b8   :  { %v431_v21 = vmul.f32 %v1155_v20, %v1153_v14  ;;  %v763_v23 = vpop.permute.xlu2 %762  ;;  %1119 = vmatmul.msk.f32.vlgmr.msrb.gmra.mxu0 %vm117_vm1, %v759_v22  ;;  %v1157_v25 = vpop.eup %1156 }
 0x5b9   :  { %v539_v26 = vmul.f32 %v1157_v25, %v1147_v4 }
 0x5ba   :  { %1099 = vmatmul.msk.f32.vlgmr.msra.gmra.mxu2 %vm362_vm3, %v431_v21 }
 0x5bb   :  { %666 = vmatpush.msra.mxu2 %v1564_v24 }
 0x5bd   :  { %667 = vmatpush.msra.mxu2 %v1571_v18 }
 0x5c0   :  { %v957_v27 = vpop.permute.xlu2 %956 }
 0x5c1   :  { %1125 = vmatmul.msk.f32.vlgmr.msra.gmra.mxu0 %vm117_vm1, %v957_v27 }
 0x5c2   :  { %1104 = vmatmul.msk.f32.vlgmr.msrb.gmra.mxu2 %vm362_vm3, %v539_v26 }
 0x5c3   :  { %1115 = vmatpush.xpose.msk.msrb.mxu2 %vm117_vm1, %v1510_v29  ;;  %v67_v29 = vld [vmem:[%s1660_s15 + $0x28] sm:$0xff] }
 0x5c4   :  { %584 = vmatpush.msra.mxu1 %v67_v29  ;;  %949 = vmatpush.msrb.mxu3 %v67_v29 }
 0x5c6   :  { %585 = vmatpush.msra.mxu1 %v66_v32  ;;  %950 = vmatpush.msrb.mxu3 %v66_v32 }
 0x5ca   :  { %1109 = vmatmul.msk.f32.vlgmr.msra.gmra.mxu2 %vm117_vm1, %v646_v60 }
 0x5cb   :  { %1120 = vmatpush.xpose.msk.msra.mxu2 %vm117_vm1, %v869_v19 }
 0x5d2   :  { %1116 = vmatmul.msk.f32.vlgmr.msrb.gmra.mxu2 %vm117_vm1, %v763_v23 }
 0x5da   :  { %1121 = vmatmul.msk.f32.vlgmr.msra.gmra.mxu2 %vm117_vm1, %v867_v28 }
 0x635   :  { %v1595_v33 = vpop.f32.mrf.mxu0 }
 0x63d   :  { %v452_v35 = vpop.f32.mrf.mxu2 }
 0x63e   :  { %1100 = vmatmul.msk.f32.vlgmr.msrb.gmra.mxu1 %vm117_vm1, %v452_v35  ;;  %v977_v36 = vpop.f32.mrf.mxu0 }
 0x63f   :  { %v978_v39 = vadd.f32 %v1534_v42, %v977_v36  ;;  %693 = vmatpush.msrb.mxu1 %v1600_v34 }
 0x641   :  { %v980_v40 = vsel %vm362_vm3, %v978_v39, -inf  ;;  %694 = vmatpush.msrb.mxu1 %v1606_v37 }
 0x642   :  { %981 = vmax.xlane.f32.xlu0 %v980_v40 }
 0x645   :  { %v564_v41 = vpop.f32.mrf.mxu2 }
 0x646   :  { %1105 = vmatmul.msk.f32.vlgmr.msra.gmra.mxu1 %vm117_vm1, %v564_v41 }
 0x647   :  { %815 = vmatpush.msra.mxu1 %v1501_v17 }
 0x64d   :  { %v669_v43 = vpop.f32.mrf.mxu2 }
 0x655   :  { %v783_v44 = vpop.f32.mrf.mxu2 }
 0x656   :  { %v784_v45 = vadd.f32 %v1534_v42, %v783_v44 }
 0x658   :  { %v786_v46 = vsel %vm362_vm3, %v784_v45, -inf }
 0x659   :  { %787 = vmax.xlane.f32.xlu1 %v786_v46 }
 0x65d   :  { %v891_v47 = vpop.f32.mrf.mxu2 }
 0x65e   :  { %v892_v48 = vadd.f32 %v1534_v42, %v891_v47 }
 0x660   :  { %v894_v49 = vsel %vm362_vm3, %v892_v48, -inf }
 0x661   :  { %895 = vmax.xlane.f32.xlu2 %v894_v49 }
 0x6b5   :  { %v982_v50 = vpop.xlane.xlu0 %981 }
 0x6b6   :  { %v983_v51 = vsub.f32 %v978_v39, %v982_v50 }
 0x6b8   :  { %v984_v52 = vmul.f32 1.442695, %v983_v51 }
 0x6ba   :  { %1158 = vpow2.f32 %v984_v52 }
 0x6bb   :  { %v475_v53 = vpop.f32.mrf.mxu1 }
 0x6bc   :  { %v499_v56 = vadd.f32 %v1527_v38, %v475_v53 }
 0x6c0   :  { %v1159_v54 = vpop.eup %1158 }
 0x6c1   :  { %v986_v55 = vsel %vm362_vm3, %v1159_v54, 0.0 }
 0x6c2   :  { %987 = vadd.xlane.f32.xlu0 %v986_v55 }
 0x6c3   :  { %v587_v57 = vpop.f32.mrf.mxu1 }
 0x6c4   :  { %v590_v58 = vadd.f32 %v587_v57, %v499_v56 }
 0x6c6   :  { %v672_v59 = vadd.f32 %v669_v43, %v590_v58 }
 0x6c8   :  { %1110 = vmatmul.msk.f32.vlgmr.msrb.gmra.mxu1 %vm117_vm1, %v672_v59 }
 0x6cc   :  { %v788_v42 = vpop.xlane.xlu1 %787 }
 0x6cd   :  { %v789_v62 = vsub.f32 %v784_v45, %v788_v42 }
 0x6cf   :  { %v790_v63 = vmul.f32 1.442695, %v789_v62 }
 0x6d1   :  { %1160 = vpow2.f32 %v790_v63 }
 0x6d4   :  { %v896_v0 = vpop.xlane.xlu2 %895 }
 0x6d5   :  { %v897_v1 = vsub.f32 %v892_v48, %v896_v0 }
 0x6d7   :  { %v1161_v3 = vpop.eup %1160  ;;  %v898_v4 = vmul.f32 1.442695, %v897_v1 }
 0x6d8   :  { %v792_v5 = vsel %vm362_vm3, %v1161_v3, 0.0 }
 0x6d9   :  { %1162 = vpow2.f32 %v898_v4  ;;  %793 = vadd.xlane.f32.xlu1 %v792_v5 }
 0x6df   :  { %v1163_v2 = vpop.eup %1162 }
 0x6e0   :  { %v900_v38 = vsel %vm362_vm3, %v1163_v2, 0.0 }
 0x6e1   :  { %901 = vadd.xlane.f32.xlu2 %v900_v38 }
 0x6f2   :  { %906 = vrot.lane.b32.xlu1 %v1501_v17, %s1197_s22  ;;  %s1066_s22 = sshll.u32 %s1199_s17, 4  ;;  %s1067_s22 = int_to_ptr.vmem [resolvable:$true] %s1066_s22 }
 0x735   :  { %v988_v12 = vpop.xlane.xlu0 %987 }
 0x745   :  { %v696_v7 = vpop.f32.mrf.mxu1 }
 0x746   :  { %v697_v8 = vadd.f32 %v1137_v6, %v696_v7 }
 0x748   :  { %699 = vst.msk [vmem:[#allocation2] sm:$0xff] %vm81_vm0, %v697_v8 }
 0x74c   :  { %v794_v9 = vpop.xlane.xlu1 %793 }
 0x74d   :  { %1164 = vrcp.f32 %v794_v9 }
 0x74e   :  { %1166 = vrcp.f32 %v988_v12 }
 0x753   :  { %v1165_v10 = vpop.eup %1164 }
 0x754   :  { %v796_v11 = vmul.f32 %v1165_v10, %v1161_v3  ;;  %v902_v13 = vpop.xlane.xlu2 %901  ;;  %v1167_v14 = vpop.eup %1166 }
 0x755   :  { %1168 = vrcp.f32 %v902_v13  ;;  %v990_v15 = vmul.f32 %v1167_v14, %v1159_v54 }
 0x756   :  { %1117 = vmatmul.msk.f32.vlgmr.msra.gmra.mxu1 %vm362_vm3, %v796_v11 }
 0x75b   :  { %v1169_v17 = vpop.eup %1168 }
 0x75c   :  { %v904_v16 = vmul.f32 %v1169_v17, %v1163_v2 }
 0x764   :  { %v907_v19 = vpop.permute.xlu1 %906 }
 0x765   :  { %927 = vmatpush.msrb.mxu1 %v907_v19  ;;  %1009 = vmatpush.msrb.mxu2 %v907_v19 }
 0x766   :  { %1122 = vmatmul.msk.f32.vlgmr.msrb.gmra.mxu1 %vm362_vm3, %v904_v16  ;;  %1126 = vmatmul.msk.f32.vlgmr.msrb.gmra.mxu2 %vm362_vm3, %v990_v15 }
 0x767   :  { %1031 = vmatpush.msra.mxu1 %v1564_v24 }
 0x769   :  { %1032 = vmatpush.msra.mxu1 %v1571_v18 }
 0x7d3   :  { %v817_v60 = vpop.f32.mrf.mxu1 }
 0x7d4   :  { %1118 = vmatmul.msk.f32.vlgmr.msra.gmra.mxu3 %vm117_vm1, %v817_v60 }
 0x7d5   :  { %1055 = vmatpush.msra.mxu3 %v1600_v34 }
 0x7d7   :  { %1056 = vmatpush.msra.mxu3 %v1606_v37 }
 0x7e3   :  { %v929_v61 = vpop.f32.mrf.mxu1 }
 0x7e4   :  { %1123 = vmatmul.msk.f32.vlgmr.msrb.gmra.mxu3 %vm117_vm1, %v929_v61 }
 0x7e9   :  { %v1011_v20 = vpop.f32.mrf.mxu2 }
 0x7ea   :  { %1127 = vmatmul.msk.f32.vlgmr.msra.gmra.mxu1 %vm117_vm1, %v1011_v20 }
 0x857   :  { %v840_v21 = vpop.f32.mrf.mxu3 }
 0x858   :  { %v864_v22 = vadd.f32 %v1595_v33, %v840_v21 }
 0x867   :  { %v952_v23 = vpop.f32.mrf.mxu3  ;;  %v1034_v25 = vpop.f32.mrf.mxu1 }
 0x868   :  { %v955_v24 = vadd.f32 %v952_v23, %v864_v22 }
 0x86a   :  { %v1037_v18 = vadd.f32 %v1034_v25, %v955_v24 }
 0x86c   :  { %1128 = vmatmul.msk.f32.vlgmr.msra.gmra.mxu3 %vm117_vm1, %v1037_v18 }
 0x8ef   :  { %v1058_v26 = vpop.f32.mrf.mxu3 }
 0x8f0   :  { %v1059_v27 = vadd.f32 %v1137_v6, %v1058_v26 }
 0x8f2   :  { %1061 = vst.msk [vmem:[#allocation2 + $0x8] sm:$0xff] %vm81_vm0, %v1059_v27 }
 0x8f3   :  { %1074 = dma.vmem_to_hbm [thread:$0]  %s1067_s22, 256, %s1069_s28, [#allocation3], %s1200_s6, %s1200_s6, %s1201_s29  }
 0x8f4   :  { %1194 = dma.done.wait [#allocation3], 256  }
 0x8f5   :  { %1195 = vsyncadd [#allocation3], 4294967040 }
 0x8f6   :  { %1079 = vsyncpa [#allocation3], 1 }

</bundles_post_ra>
